<compile_context>
chip_gen: v5e
topology: v5e:2x2
jax: 0.10.0
libtpu: 0.0.40
codegen_flags: <defaults>
</compile_context>

<pallas_src>
import functools

import jax
import jax.numpy as jnp
import numpy as np
from jax.experimental import pallas as pl
from jax.experimental.pallas import tpu as pltpu


def _make_divisible(v, divisor=8, min_value=None):
    if min_value is None:
        min_value = divisor
    new_v = max(min_value, int(v + divisor / 2) // divisor * divisor)
    if new_v < 0.9 * v:
        new_v += divisor
    return new_v


def _hardswish(x):
    return x * jnp.clip(x + 3.0, 0.0, 6.0) * (1.0 / 6.0)


def _hardsigmoid(x):
    return jnp.clip(x + 3.0, 0.0, 6.0) * (1.0 / 6.0)


def _inverted_residual_kernel(
    x_ref,       # (Cin, L)        Nb samples, channels on sublanes, Nb*HW on lanes
    w_exp_ref,   # (Cexp, Cin)     1x1 expand conv weight (BN scale folded in)
    w_dw_ref,    # (Cexp, K*K)     depthwise conv weight (BN scale folded in)
    w_proj_ref,  # (Cout, Cexp)    1x1 project conv weight (BN scale folded in)
    w_se1_ref,   # (Csq, Cexp)     SE fc1 weight
    w_se2_ref,   # (Cexp, Csq)     SE fc2 weight
    bias_ref,    # (Cexp, 5)       packed biases: exp_b|dw_b|se2_b|proj_b|se1_b
    tbl_ref,     # (8+NBP, L)      rows 0..7: tap edge masks; rows 8..: sample indicators
    out_ref,     # (Cout, L)
    *, H, W, K, pad, Nb, NBP, Cout, Csq, n_masks, use_res,
):
    HW = H * W
    L = Nb * HW
    inv_hw = 1.0 / HW

    exp_b = bias_ref[:, 0:1]
    dw_b = bias_ref[:, 1:2]
    se2_b = bias_ref[:, 2:3]
    proj_b = bias_ref[0:Cout, 3:4]
    se1_b = bias_ref[0:Csq, 4:5]

    # ---- 1x1 expand conv (folded BN) + Hardswish; lanes = Nb*HW ----
    h = jnp.dot(w_exp_ref[...], x_ref[...], preferred_element_type=jnp.float32)
    h = _hardswish(h + exp_b)                                  # (Cexp, L)

    # ---- KxK depthwise conv (stride=1, dilation=1): roll + precomputed masks ----
    w_dw = w_dw_ref[...]                                       # (Cexp, K*K)
    ctr = pad * K + pad
    dw = h * w_dw[:, ctr:ctr + 1]                              # center tap, no mask
    m = 0
    for ki in range(K):
        for kj in range(K):
            if ki == pad and kj == pad:
                continue
            di = ki - pad
            dj = kj - pad
            shift = (-(di * W + dj)) % L                       # result[p] = h[p + di*W + dj]
            t = ki * K + kj
            rolled = pltpu.roll(h, shift=shift, axis=1)        # XLU lane rotation
            rolled = rolled * tbl_ref[m:m + 1, :]              # trace-time edge mask
            dw = dw + rolled * w_dw[:, t:t + 1]                # per-channel tap weight
            m += 1
    dw = _hardswish(dw + dw_b)                                 # (Cexp, L)

    # ---- Squeeze-and-Excite, per-sample segmented (padded sample axis = NBP) ----
    col_ids = jax.lax.broadcasted_iota(jnp.int32, (1, NBP), 1)
    s = jnp.zeros((dw.shape[0], NBP), jnp.float32)             # (Cexp, NBP)
    for b in range(Nb):
        pooled = jnp.sum(dw[:, b * HW:(b + 1) * HW], axis=1, keepdims=True) * inv_hw
        s = s + pooled * (col_ids == b).astype(jnp.float32)
    s1 = jnp.maximum(
        jnp.dot(w_se1_ref[...], s, preferred_element_type=jnp.float32) + se1_b, 0.0)
    s2 = _hardsigmoid(
        jnp.dot(w_se2_ref[...], s1, preferred_element_type=jnp.float32) + se2_b)
    # Broadcast gates back to lanes: indicator rows are zero for padded slots.
    scale = jnp.dot(s2, tbl_ref[n_masks:n_masks + NBP, :],
                    preferred_element_type=jnp.float32)        # (Cexp, L)
    dw = dw * scale

    # ---- 1x1 project conv (folded BN), optional residual ----
    o = jnp.dot(w_proj_ref[...], dw, preferred_element_type=jnp.float32) + proj_b
    if use_res:                               # static flag (stride==1 and Cin==Cout)
        o = o + x_ref[...]
    out_ref[...] = o                                           # lane-dense store


def inverted_residual_pallas(x_nchw, params, *, K, pad, use_res, max_nb=4):
    (w_exp, exp_sc, exp_b, w_dw, dw_sc, dw_b,
     w_se1t, b_se1, w_se2, b_se2, w_proj, proj_sc, proj_b) = params

    N, Cin, H, W = x_nchw.shape
    Cexp, Csq = w_se1t.shape
    Cout = w_proj.shape[0]
    HW = H * W

    # Samples folded per grid step (vreg-pressure bound in f32: keep <= 4).
    Nb = min(N, max_nb)
    while N % Nb:
        Nb -= 1
    L = Nb * HW
    NBP = 8  # padded per-step sample-slot count (keeps SE matmul dims >= 8)

    # ---- fold BN scales into conv weights (pure parameter algebra) ----
    w_exp_f = (w_exp * exp_sc).astype(jnp.float32)
    w_dw_f = (w_dw * dw_sc).astype(jnp.float32)
    w_proj_f = (w_proj * proj_sc).astype(jnp.float32)
    w_se1 = jnp.transpose(w_se1t).astype(jnp.float32)          # (Csq, Cexp)

    # ---- pack remaining per-channel bias vectors into one small array ----
    bias_pack = jnp.zeros((Cexp, 5), jnp.float32)
    bias_pack = bias_pack.at[:, 0:1].set(exp_b)
    bias_pack = bias_pack.at[:, 1:2].set(dw_b)
    bias_pack = bias_pack.at[:, 2:3].set(b_se2)
    bias_pack = bias_pack.at[:Cout, 3:4].set(proj_b)
    bias_pack = bias_pack.at[:Csq, 4:5].set(b_se1.reshape(Csq, 1))

    # ---- trace-time lane tables: depthwise edge masks + per-sample indicators ----
    pos = np.arange(L)
    r = (pos % HW) // W
    c = (pos % HW) % W
    rows = []
    for ki in range(K):
        for kj in range(K):
            if ki == pad and kj == pad:
                continue
            di, dj = ki - pad, kj - pad
            rows.append(((r + di >= 0) & (r + di < H) &
                         (c + dj >= 0) & (c + dj < W)).astype(np.float32))
    n_masks = len(rows)                                         # K*K - 1
    for b in range(NBP):
        ind = np.zeros(L, np.float32)
        if b < Nb:
            ind[b * HW:(b + 1) * HW] = 1.0
        rows.append(ind)
    lane_tbl = jnp.asarray(np.stack(rows))                      # (n_masks+NBP, L)

    # Channels on sublanes, (sample, pixel) on lanes -> lane-dense blocks of Nb samples.
    x = jnp.transpose(x_nchw.astype(jnp.float32), (1, 0, 2, 3)).reshape(Cin, N * HW)

    kernel = functools.partial(
        _inverted_residual_kernel,
        H=H, W=W, K=K, pad=pad, Nb=Nb, NBP=NBP, Cout=Cout, Csq=Csq,
        n_masks=n_masks, use_res=use_res)

    def full_spec(a):
        nd = a.ndim
        return pl.BlockSpec(a.shape, lambda n, _nd=nd: (0,) * _nd)

    out = pl.pallas_call(
        kernel,
        out_shape=jax.ShapeDtypeStruct((Cout, N * HW), jnp.float32),
        grid=(N // Nb,),
        in_specs=[
            pl.BlockSpec((Cin, L), lambda n: (0, n)),
            full_spec(w_exp_f), full_spec(w_dw_f), full_spec(w_proj_f),
            full_spec(w_se1), full_spec(w_se2),
            full_spec(bias_pack), full_spec(lane_tbl),
        ],
        out_specs=pl.BlockSpec((Cout, L), lambda n: (0, n)),
        compiler_params=pltpu.CompilerParams(
            dimension_semantics=("parallel",),
        ),
    )(x, w_exp_f, w_dw_f, w_proj_f, w_se1, w_se2, bias_pack, lane_tbl)

    # (Cout, N*HW) -> NCHW (small wrapper-side layout plumbing, outside the kernel).
    return jnp.transpose(out.reshape(Cout, N, H, W), (1, 0, 2, 3))


def reference_jax(x, params, *, K, pad, use_res):
    """Pure-JAX NCHW reference used only for a sanity check."""
    (w_exp, exp_sc, exp_b, w_dw, dw_sc, dw_b,
     w_se1t, b_se1, w_se2, b_se2, w_proj, proj_sc, proj_b) = params
    N, Cin, H, W = x.shape

    def cvec(v):  # (C,1) -> (1,C,1,1)
        return v.reshape(1, -1, 1, 1)

    h = jnp.einsum('ec,nchw->nehw', w_exp, x)
    h = _hardswish(h * cvec(exp_sc) + cvec(exp_b))
    hp = jnp.pad(h, ((0, 0), (0, 0), (pad, pad), (pad, pad)))
    dw = jnp.zeros_like(h)
    for ki in range(K):
        for kj in range(K):
            dw = dw + hp[:, :, ki:ki + H, kj:kj + W] * w_dw[:, ki * K + kj].reshape(1, -1, 1, 1)
    dw = _hardswish(dw * cvec(dw_sc) + cvec(dw_b))
    s = dw.mean(axis=(2, 3))                                  # (N, Cexp)
    s1 = jnp.maximum(s @ w_se1t + b_se1, 0.0)                 # (N, Csq)
    s2 = _hardsigmoid(s1 @ w_se2.T + b_se2.reshape(1, -1))    # (N, Cexp)
    dw = dw * s2[:, :, None, None]
    o = jnp.einsum('oe,nehw->nohw', w_proj, dw)
    o = o * cvec(proj_sc) + cvec(proj_b)
    if use_res:
        o = o + x
    return o


def make_params(key, Cin, Cexp, Csq, Cout, K):
    ks = jax.random.split(key, 20)

    def bn_fold(kg, kb, km, kv, C, eps=1e-5):
        gamma = 1.0 + 0.1 * jax.random.normal(kg, (C,), jnp.float32)
        beta = 0.1 * jax.random.normal(kb, (C,), jnp.float32)
        mean = 0.1 * jax.random.normal(km, (C,), jnp.float32)
        var = jnp.abs(jax.random.normal(kv, (C,), jnp.float32)) + 0.5
        scale = gamma / jnp.sqrt(var + eps)
        bias = beta - mean * scale
        return scale.reshape(C, 1), bias.reshape(C, 1)

    w_exp = 0.2 * jax.random.normal(ks[0], (Cexp, Cin), jnp.float32)
    exp_sc, exp_b = bn_fold(ks[1], ks[2], ks[3], ks[4], Cexp)
    w_dw = 0.2 * jax.random.normal(ks[5], (Cexp, K * K), jnp.float32)
    dw_sc, dw_b = bn_fold(ks[6], ks[7], ks[8], ks[9], Cexp)
    w_se1t = 0.2 * jax.random.normal(ks[10], (Cexp, Csq), jnp.float32)   # fc1 weight^T
    b_se1 = 0.1 * jax.random.normal(ks[11], (1, Csq), jnp.float32)
    w_se2 = 0.2 * jax.random.normal(ks[12], (Cexp, Csq), jnp.float32)    # fc2 weight
    b_se2 = 0.1 * jax.random.normal(ks[13], (Cexp, 1), jnp.float32)
    w_proj = 0.2 * jax.random.normal(ks[14], (Cout, Cexp), jnp.float32)
    proj_sc, proj_b = bn_fold(ks[15], ks[16], ks[17], ks[18], Cout)
    return (w_exp, exp_sc, exp_b, w_dw, dw_sc, dw_b,
            w_se1t, b_se1, w_se2, b_se2, w_proj, proj_sc, proj_b)


if __name__ == "__main__":
    # InvertedResidualConfig(8, 3, 16, 8, use_se=True, activation='HS',
    #                        stride=1, dilation=1, width_mult=1.0)
    Cin = _make_divisible(8 * 1.0)          # 8
    Cexp = _make_divisible(16 * 1.0)        # 16
    Cout = _make_divisible(8 * 1.0)         # 8
    Csq = _make_divisible(Cexp // 4)        # 8
    K = 3
    pad = (K - 1) // 2                      # dilation=1
    stride = 1
    use_res = (stride == 1 and Cin == Cout)

    N, H, W = 8, 16, 16                     # 8 samples -> Nb=4 per grid step, grid=(2,)

    key = jax.random.PRNGKey(0)
    kx, kp = jax.random.split(key)
    x = jax.random.normal(kx, (N, Cin, H, W), jnp.float32)   # NCHW like PyTorch
    params = make_params(kp, Cin, Cexp, Csq, Cout, K)

    out = inverted_residual_pallas(x, params, K=K, pad=pad, use_res=use_res)
    out = jax.block_until_ready(out)

    ref = jax.block_until_ready(reference_jax(x, params, K=K, pad=pad, use_res=use_res))
    np.testing.assert_allclose(np.asarray(out), np.asarray(ref), rtol=1e-2, atol=1e-2)

    print("KERNEL_OK")
</pallas_src>

<mosaic_0001>
module attributes {stable_mosaic.version = 11 : i64} {
  func.func @_inverted_residual_kernel(%arg0: i32, %arg1: memref<8x1024xf32, #tpu.memory_space<vmem>>, %arg2: memref<16x8xf32, #tpu.memory_space<vmem>>, %arg3: memref<16x9xf32, #tpu.memory_space<vmem>>, %arg4: memref<8x16xf32, #tpu.memory_space<vmem>>, %arg5: memref<8x16xf32, #tpu.memory_space<vmem>>, %arg6: memref<16x8xf32, #tpu.memory_space<vmem>>, %arg7: memref<16x5xf32, #tpu.memory_space<vmem>>, %arg8: memref<16x1024xf32, #tpu.memory_space<vmem>>, %arg9: memref<8x1024xf32, #tpu.memory_space<vmem>>) attributes {dimension_semantics = [#tpu.dimension_semantics<parallel>], iteration_bounds = array<i64: 2>, scalar_prefetch = 0 : i64, scratch_operands = 0 : i64, tpu.core_type = #tpu.core_type<tc>, window_params = [{transform_indices = @transform_0, window_bounds = array<i64: 8, 1024>}, {pipeline_mode = #tpu.pipeline_mode<synchronous>, transform_indices = @transform_1, window_bounds = array<i64: 16, 8>}, {pipeline_mode = #tpu.pipeline_mode<synchronous>, transform_indices = @transform_2, window_bounds = array<i64: 16, 9>}, {pipeline_mode = #tpu.pipeline_mode<synchronous>, transform_indices = @transform_3, window_bounds = array<i64: 8, 16>}, {pipeline_mode = #tpu.pipeline_mode<synchronous>, transform_indices = @transform_4, window_bounds = array<i64: 8, 16>}, {pipeline_mode = #tpu.pipeline_mode<synchronous>, transform_indices = @transform_5, window_bounds = array<i64: 16, 8>}, {pipeline_mode = #tpu.pipeline_mode<synchronous>, transform_indices = @transform_6, window_bounds = array<i64: 16, 5>}, {pipeline_mode = #tpu.pipeline_mode<synchronous>, transform_indices = @transform_7, window_bounds = array<i64: 16, 1024>}, {transform_indices = @transform_8, window_bounds = array<i64: 8, 1024>}]} {
    %c0 = arith.constant 0 : index
    %c0_0 = arith.constant 0 : index
    %0 = vector.load %arg7[%c0, %c0_0] : memref<16x5xf32, #tpu.memory_space<vmem>>, vector<16x1xf32>
    %c0_1 = arith.constant 0 : index
    %c1 = arith.constant 1 : index
    %1 = vector.load %arg7[%c0_1, %c1] : memref<16x5xf32, #tpu.memory_space<vmem>>, vector<16x1xf32>
    %c0_2 = arith.constant 0 : index
    %c2 = arith.constant 2 : index
    %2 = vector.load %arg7[%c0_2, %c2] : memref<16x5xf32, #tpu.memory_space<vmem>>, vector<16x1xf32>
    %c0_3 = arith.constant 0 : index
    %c3 = arith.constant 3 : index
    %3 = vector.load %arg7[%c0_3, %c3] : memref<16x5xf32, #tpu.memory_space<vmem>>, vector<8x1xf32>
    %c0_4 = arith.constant 0 : index
    %c4 = arith.constant 4 : index
    %4 = vector.load %arg7[%c0_4, %c4] : memref<16x5xf32, #tpu.memory_space<vmem>>, vector<8x1xf32>
    %c0_5 = arith.constant 0 : index
    %c0_6 = arith.constant 0 : index
    %5 = vector.load %arg2[%c0_5, %c0_6] : memref<16x8xf32, #tpu.memory_space<vmem>>, vector<16x8xf32>
    %c0_7 = arith.constant 0 : index
    %c0_8 = arith.constant 0 : index
    %6 = vector.load %arg1[%c0_7, %c0_8] : memref<8x1024xf32, #tpu.memory_space<vmem>>, vector<8x1024xf32>
    %cst = arith.constant dense<0.000000e+00> : vector<16x1024xf32>
    %7 = tpu.matmul %5, %6, %cst {dimension_numbers = #tpu.dot_dimension_numbers<[1], [0], [0], [1], [0, 0, 1, 1], [], []>} : vector<16x8xf32>, vector<8x1024xf32>, vector<16x1024xf32> -> vector<16x1024xf32>
    %8 = vector.broadcast %0 : vector<16x1xf32> to vector<16x1024xf32>
    %9 = arith.addf %7, %8 : vector<16x1024xf32>
    %cst_9 = arith.constant 3.000000e+00 : f32
    %10 = vector.broadcast %cst_9 : f32 to vector<16x1024xf32>
    %11 = arith.addf %9, %10 : vector<16x1024xf32>
    %cst_10 = arith.constant 0.000000e+00 : f32
    %cst_11 = arith.constant 6.000000e+00 : f32
    %12 = vector.broadcast %cst_10 : f32 to vector<16x1024xf32>
    %13 = arith.maximumf %12, %11 : vector<16x1024xf32>
    %14 = vector.broadcast %cst_11 : f32 to vector<16x1024xf32>
    %15 = arith.minimumf %14, %13 : vector<16x1024xf32>
    %16 = arith.mulf %9, %15 : vector<16x1024xf32>
    %cst_12 = arith.constant 0.166666672 : f32
    %17 = vector.broadcast %cst_12 : f32 to vector<16x1024xf32>
    %18 = arith.mulf %16, %17 : vector<16x1024xf32>
    %c0_13 = arith.constant 0 : index
    %c0_14 = arith.constant 0 : index
    %19 = vector.load %arg3[%c0_13, %c0_14] : memref<16x9xf32, #tpu.memory_space<vmem>>, vector<16x9xf32>
    %20 = vector.extract_strided_slice %19 {offsets = [0, 4], sizes = [16, 1], strides = [1, 1]} : vector<16x9xf32> to vector<16x1xf32>
    %21 = vector.broadcast %20 : vector<16x1xf32> to vector<16x1024xf32>
    %22 = arith.mulf %18, %21 : vector<16x1024xf32>
    %c17_i32 = arith.constant 17 : i32
    %23 = tpu.dynamic_rotate %18 by %c17_i32 dim 1 : vector<16x1024xf32>, i32 -> vector<16x1024xf32>
    %c0_15 = arith.constant 0 : index
    %c0_16 = arith.constant 0 : index
    %24 = vector.load %arg8[%c0_15, %c0_16] : memref<16x1024xf32, #tpu.memory_space<vmem>>, vector<1x1024xf32>
    %25 = vector.broadcast %24 : vector<1x1024xf32> to vector<16x1024xf32>
    %26 = arith.mulf %23, %25 : vector<16x1024xf32>
    %27 = vector.extract_strided_slice %19 {offsets = [0, 0], sizes = [16, 1], strides = [1, 1]} : vector<16x9xf32> to vector<16x1xf32>
    %28 = vector.broadcast %27 : vector<16x1xf32> to vector<16x1024xf32>
    %29 = arith.mulf %26, %28 : vector<16x1024xf32>
    %30 = arith.addf %22, %29 : vector<16x1024xf32>
    %c16_i32 = arith.constant 16 : i32
    %31 = tpu.dynamic_rotate %18 by %c16_i32 dim 1 : vector<16x1024xf32>, i32 -> vector<16x1024xf32>
    %c1_17 = arith.constant 1 : index
    %c0_18 = arith.constant 0 : index
    %32 = vector.load %arg8[%c1_17, %c0_18] : memref<16x1024xf32, #tpu.memory_space<vmem>>, vector<1x1024xf32>
    %33 = vector.broadcast %32 : vector<1x1024xf32> to vector<16x1024xf32>
    %34 = arith.mulf %31, %33 : vector<16x1024xf32>
    %35 = vector.extract_strided_slice %19 {offsets = [0, 1], sizes = [16, 1], strides = [1, 1]} : vector<16x9xf32> to vector<16x1xf32>
    %36 = vector.broadcast %35 : vector<16x1xf32> to vector<16x1024xf32>
    %37 = arith.mulf %34, %36 : vector<16x1024xf32>
    %38 = arith.addf %30, %37 : vector<16x1024xf32>
    %c15_i32 = arith.constant 15 : i32
    %39 = tpu.dynamic_rotate %18 by %c15_i32 dim 1 : vector<16x1024xf32>, i32 -> vector<16x1024xf32>
    %c2_19 = arith.constant 2 : index
    %c0_20 = arith.constant 0 : index
    %40 = vector.load %arg8[%c2_19, %c0_20] : memref<16x1024xf32, #tpu.memory_space<vmem>>, vector<1x1024xf32>
    %41 = vector.broadcast %40 : vector<1x1024xf32> to vector<16x1024xf32>
    %42 = arith.mulf %39, %41 : vector<16x1024xf32>
    %43 = vector.extract_strided_slice %19 {offsets = [0, 2], sizes = [16, 1], strides = [1, 1]} : vector<16x9xf32> to vector<16x1xf32>
    %44 = vector.broadcast %43 : vector<16x1xf32> to vector<16x1024xf32>
    %45 = arith.mulf %42, %44 : vector<16x1024xf32>
    %46 = arith.addf %38, %45 : vector<16x1024xf32>
    %c1_i32 = arith.constant 1 : i32
    %47 = tpu.dynamic_rotate %18 by %c1_i32 dim 1 : vector<16x1024xf32>, i32 -> vector<16x1024xf32>
    %c3_21 = arith.constant 3 : index
    %c0_22 = arith.constant 0 : index
    %48 = vector.load %arg8[%c3_21, %c0_22] : memref<16x1024xf32, #tpu.memory_space<vmem>>, vector<1x1024xf32>
    %49 = vector.broadcast %48 : vector<1x1024xf32> to vector<16x1024xf32>
    %50 = arith.mulf %47, %49 : vector<16x1024xf32>
    %51 = vector.extract_strided_slice %19 {offsets = [0, 3], sizes = [16, 1], strides = [1, 1]} : vector<16x9xf32> to vector<16x1xf32>
    %52 = vector.broadcast %51 : vector<16x1xf32> to vector<16x1024xf32>
    %53 = arith.mulf %50, %52 : vector<16x1024xf32>
    %54 = arith.addf %46, %53 : vector<16x1024xf32>
    %c1023_i32 = arith.constant 1023 : i32
    %55 = tpu.dynamic_rotate %18 by %c1023_i32 dim 1 : vector<16x1024xf32>, i32 -> vector<16x1024xf32>
    %c4_23 = arith.constant 4 : index
    %c0_24 = arith.constant 0 : index
    %56 = vector.load %arg8[%c4_23, %c0_24] : memref<16x1024xf32, #tpu.memory_space<vmem>>, vector<1x1024xf32>
    %57 = vector.broadcast %56 : vector<1x1024xf32> to vector<16x1024xf32>
    %58 = arith.mulf %55, %57 : vector<16x1024xf32>
    %59 = vector.extract_strided_slice %19 {offsets = [0, 5], sizes = [16, 1], strides = [1, 1]} : vector<16x9xf32> to vector<16x1xf32>
    %60 = vector.broadcast %59 : vector<16x1xf32> to vector<16x1024xf32>
    %61 = arith.mulf %58, %60 : vector<16x1024xf32>
    %62 = arith.addf %54, %61 : vector<16x1024xf32>
    %c1009_i32 = arith.constant 1009 : i32
    %63 = tpu.dynamic_rotate %18 by %c1009_i32 dim 1 : vector<16x1024xf32>, i32 -> vector<16x1024xf32>
    %c5 = arith.constant 5 : index
    %c0_25 = arith.constant 0 : index
    %64 = vector.load %arg8[%c5, %c0_25] : memref<16x1024xf32, #tpu.memory_space<vmem>>, vector<1x1024xf32>
    %65 = vector.broadcast %64 : vector<1x1024xf32> to vector<16x1024xf32>
    %66 = arith.mulf %63, %65 : vector<16x1024xf32>
    %67 = vector.extract_strided_slice %19 {offsets = [0, 6], sizes = [16, 1], strides = [1, 1]} : vector<16x9xf32> to vector<16x1xf32>
    %68 = vector.broadcast %67 : vector<16x1xf32> to vector<16x1024xf32>
    %69 = arith.mulf %66, %68 : vector<16x1024xf32>
    %70 = arith.addf %62, %69 : vector<16x1024xf32>
    %c1008_i32 = arith.constant 1008 : i32
    %71 = tpu.dynamic_rotate %18 by %c1008_i32 dim 1 : vector<16x1024xf32>, i32 -> vector<16x1024xf32>
    %c6 = arith.constant 6 : index
    %c0_26 = arith.constant 0 : index
    %72 = vector.load %arg8[%c6, %c0_26] : memref<16x1024xf32, #tpu.memory_space<vmem>>, vector<1x1024xf32>
    %73 = vector.broadcast %72 : vector<1x1024xf32> to vector<16x1024xf32>
    %74 = arith.mulf %71, %73 : vector<16x1024xf32>
    %75 = vector.extract_strided_slice %19 {offsets = [0, 7], sizes = [16, 1], strides = [1, 1]} : vector<16x9xf32> to vector<16x1xf32>
    %76 = vector.broadcast %75 : vector<16x1xf32> to vector<16x1024xf32>
    %77 = arith.mulf %74, %76 : vector<16x1024xf32>
    %78 = arith.addf %70, %77 : vector<16x1024xf32>
    %c1007_i32 = arith.constant 1007 : i32
    %79 = tpu.dynamic_rotate %18 by %c1007_i32 dim 1 : vector<16x1024xf32>, i32 -> vector<16x1024xf32>
    %c7 = arith.constant 7 : index
    %c0_27 = arith.constant 0 : index
    %80 = vector.load %arg8[%c7, %c0_27] : memref<16x1024xf32, #tpu.memory_space<vmem>>, vector<1x1024xf32>
    %81 = vector.broadcast %80 : vector<1x1024xf32> to vector<16x1024xf32>
    %82 = arith.mulf %79, %81 : vector<16x1024xf32>
    %83 = vector.extract_strided_slice %19 {offsets = [0, 8], sizes = [16, 1], strides = [1, 1]} : vector<16x9xf32> to vector<16x1xf32>
    %84 = vector.broadcast %83 : vector<16x1xf32> to vector<16x1024xf32>
    %85 = arith.mulf %82, %84 : vector<16x1024xf32>
    %86 = arith.addf %78, %85 : vector<16x1024xf32>
    %87 = vector.broadcast %1 : vector<16x1xf32> to vector<16x1024xf32>
    %88 = arith.addf %86, %87 : vector<16x1024xf32>
    %cst_28 = arith.constant 3.000000e+00 : f32
    %89 = vector.broadcast %cst_28 : f32 to vector<16x1024xf32>
    %90 = arith.addf %88, %89 : vector<16x1024xf32>
    %cst_29 = arith.constant 0.000000e+00 : f32
    %cst_30 = arith.constant 6.000000e+00 : f32
    %91 = vector.broadcast %cst_29 : f32 to vector<16x1024xf32>
    %92 = arith.maximumf %91, %90 : vector<16x1024xf32>
    %93 = vector.broadcast %cst_30 : f32 to vector<16x1024xf32>
    %94 = arith.minimumf %93, %92 : vector<16x1024xf32>
    %95 = arith.mulf %88, %94 : vector<16x1024xf32>
    %cst_31 = arith.constant 0.166666672 : f32
    %96 = vector.broadcast %cst_31 : f32 to vector<16x1024xf32>
    %97 = arith.mulf %95, %96 : vector<16x1024xf32>
    %98 = tpu.iota {dimensions = array<i32: 1>} : vector<1x8xi32>
    %cst_32 = arith.constant 0.000000e+00 : f32
    %99 = vector.broadcast %cst_32 : f32 to vector<16x8xf32>
    %100 = vector.extract_strided_slice %97 {offsets = [0, 0], sizes = [16, 256], strides = [1, 1]} : vector<16x1024xf32> to vector<16x256xf32>
    %cst_33 = arith.constant dense<0.000000e+00> : vector<16xf32>
    %101 = vector.multi_reduction <add>, %100, %cst_33 [1] : vector<16x256xf32> to vector<16xf32>
    %102 = vector.shape_cast %101 : vector<16xf32> to vector<16x1xf32>
    %cst_34 = arith.constant 3.906250e-03 : f32
    %103 = vector.broadcast %cst_34 : f32 to vector<16x1xf32>
    %104 = arith.mulf %102, %103 : vector<16x1xf32>
    %c0_i32 = arith.constant 0 : i32
    %105 = vector.broadcast %c0_i32 : i32 to vector<1x8xi32>
    %106 = arith.cmpi eq, %98, %105 : vector<1x8xi32>
    %107 = arith.extui %106 : vector<1x8xi1> to vector<1x8xi32>
    %108 = arith.sitofp %107 : vector<1x8xi32> to vector<1x8xf32>
    %109 = vector.broadcast %104 : vector<16x1xf32> to vector<16x8xf32>
    %110 = vector.broadcast %108 : vector<1x8xf32> to vector<16x8xf32>
    %111 = arith.mulf %109, %110 : vector<16x8xf32>
    %112 = arith.addf %99, %111 : vector<16x8xf32>
    %113 = vector.extract_strided_slice %97 {offsets = [0, 256], sizes = [16, 256], strides = [1, 1]} : vector<16x1024xf32> to vector<16x256xf32>
    %cst_35 = arith.constant dense<0.000000e+00> : vector<16xf32>
    %114 = vector.multi_reduction <add>, %113, %cst_35 [1] : vector<16x256xf32> to vector<16xf32>
    %115 = vector.shape_cast %114 : vector<16xf32> to vector<16x1xf32>
    %cst_36 = arith.constant 3.906250e-03 : f32
    %116 = vector.broadcast %cst_36 : f32 to vector<16x1xf32>
    %117 = arith.mulf %115, %116 : vector<16x1xf32>
    %c1_i32_37 = arith.constant 1 : i32
    %118 = vector.broadcast %c1_i32_37 : i32 to vector<1x8xi32>
    %119 = arith.cmpi eq, %98, %118 : vector<1x8xi32>
    %120 = arith.extui %119 : vector<1x8xi1> to vector<1x8xi32>
    %121 = arith.sitofp %120 : vector<1x8xi32> to vector<1x8xf32>
    %122 = vector.broadcast %117 : vector<16x1xf32> to vector<16x8xf32>
    %123 = vector.broadcast %121 : vector<1x8xf32> to vector<16x8xf32>
    %124 = arith.mulf %122, %123 : vector<16x8xf32>
    %125 = arith.addf %112, %124 : vector<16x8xf32>
    %126 = vector.extract_strided_slice %97 {offsets = [0, 512], sizes = [16, 256], strides = [1, 1]} : vector<16x1024xf32> to vector<16x256xf32>
    %cst_38 = arith.constant dense<0.000000e+00> : vector<16xf32>
    %127 = vector.multi_reduction <add>, %126, %cst_38 [1] : vector<16x256xf32> to vector<16xf32>
    %128 = vector.shape_cast %127 : vector<16xf32> to vector<16x1xf32>
    %cst_39 = arith.constant 3.906250e-03 : f32
    %129 = vector.broadcast %cst_39 : f32 to vector<16x1xf32>
    %130 = arith.mulf %128, %129 : vector<16x1xf32>
    %c2_i32 = arith.constant 2 : i32
    %131 = vector.broadcast %c2_i32 : i32 to vector<1x8xi32>
    %132 = arith.cmpi eq, %98, %131 : vector<1x8xi32>
    %133 = arith.extui %132 : vector<1x8xi1> to vector<1x8xi32>
    %134 = arith.sitofp %133 : vector<1x8xi32> to vector<1x8xf32>
    %135 = vector.broadcast %130 : vector<16x1xf32> to vector<16x8xf32>
    %136 = vector.broadcast %134 : vector<1x8xf32> to vector<16x8xf32>
    %137 = arith.mulf %135, %136 : vector<16x8xf32>
    %138 = arith.addf %125, %137 : vector<16x8xf32>
    %139 = vector.extract_strided_slice %97 {offsets = [0, 768], sizes = [16, 256], strides = [1, 1]} : vector<16x1024xf32> to vector<16x256xf32>
    %cst_40 = arith.constant dense<0.000000e+00> : vector<16xf32>
    %140 = vector.multi_reduction <add>, %139, %cst_40 [1] : vector<16x256xf32> to vector<16xf32>
    %141 = vector.shape_cast %140 : vector<16xf32> to vector<16x1xf32>
    %cst_41 = arith.constant 3.906250e-03 : f32
    %142 = vector.broadcast %cst_41 : f32 to vector<16x1xf32>
    %143 = arith.mulf %141, %142 : vector<16x1xf32>
    %c3_i32 = arith.constant 3 : i32
    %144 = vector.broadcast %c3_i32 : i32 to vector<1x8xi32>
    %145 = arith.cmpi eq, %98, %144 : vector<1x8xi32>
    %146 = arith.extui %145 : vector<1x8xi1> to vector<1x8xi32>
    %147 = arith.sitofp %146 : vector<1x8xi32> to vector<1x8xf32>
    %148 = vector.broadcast %143 : vector<16x1xf32> to vector<16x8xf32>
    %149 = vector.broadcast %147 : vector<1x8xf32> to vector<16x8xf32>
    %150 = arith.mulf %148, %149 : vector<16x8xf32>
    %151 = arith.addf %138, %150 : vector<16x8xf32>
    %c0_42 = arith.constant 0 : index
    %c0_43 = arith.constant 0 : index
    %152 = vector.load %arg5[%c0_42, %c0_43] : memref<8x16xf32, #tpu.memory_space<vmem>>, vector<8x16xf32>
    %cst_44 = arith.constant dense<0.000000e+00> : vector<8x8xf32>
    %153 = tpu.matmul %152, %151, %cst_44 {dimension_numbers = #tpu.dot_dimension_numbers<[1], [0], [0], [1], [0, 0, 1, 1], [], []>} : vector<8x16xf32>, vector<16x8xf32>, vector<8x8xf32> -> vector<8x8xf32>
    %154 = vector.broadcast %4 : vector<8x1xf32> to vector<8x8xf32>
    %155 = arith.addf %153, %154 : vector<8x8xf32>
    %cst_45 = arith.constant 0.000000e+00 : f32
    %156 = vector.broadcast %cst_45 : f32 to vector<8x8xf32>
    %157 = arith.maximumf %155, %156 : vector<8x8xf32>
    %c0_46 = arith.constant 0 : index
    %c0_47 = arith.constant 0 : index
    %158 = vector.load %arg6[%c0_46, %c0_47] : memref<16x8xf32, #tpu.memory_space<vmem>>, vector<16x8xf32>
    %cst_48 = arith.constant dense<0.000000e+00> : vector<16x8xf32>
    %159 = tpu.matmul %158, %157, %cst_48 {dimension_numbers = #tpu.dot_dimension_numbers<[1], [0], [0], [1], [0, 0, 1, 1], [], []>} : vector<16x8xf32>, vector<8x8xf32>, vector<16x8xf32> -> vector<16x8xf32>
    %160 = vector.broadcast %2 : vector<16x1xf32> to vector<16x8xf32>
    %161 = arith.addf %159, %160 : vector<16x8xf32>
    %cst_49 = arith.constant 3.000000e+00 : f32
    %162 = vector.broadcast %cst_49 : f32 to vector<16x8xf32>
    %163 = arith.addf %161, %162 : vector<16x8xf32>
    %cst_50 = arith.constant 0.000000e+00 : f32
    %cst_51 = arith.constant 6.000000e+00 : f32
    %164 = vector.broadcast %cst_50 : f32 to vector<16x8xf32>
    %165 = arith.maximumf %164, %163 : vector<16x8xf32>
    %166 = vector.broadcast %cst_51 : f32 to vector<16x8xf32>
    %167 = arith.minimumf %166, %165 : vector<16x8xf32>
    %cst_52 = arith.constant 0.166666672 : f32
    %168 = vector.broadcast %cst_52 : f32 to vector<16x8xf32>
    %169 = arith.mulf %167, %168 : vector<16x8xf32>
    %c8 = arith.constant 8 : index
    %c0_53 = arith.constant 0 : index
    %170 = vector.load %arg8[%c8, %c0_53] : memref<16x1024xf32, #tpu.memory_space<vmem>>, vector<8x1024xf32>
    %cst_54 = arith.constant dense<0.000000e+00> : vector<16x1024xf32>
    %171 = tpu.matmul %169, %170, %cst_54 {dimension_numbers = #tpu.dot_dimension_numbers<[1], [0], [0], [1], [0, 0, 1, 1], [], []>} : vector<16x8xf32>, vector<8x1024xf32>, vector<16x1024xf32> -> vector<16x1024xf32>
    %172 = arith.mulf %97, %171 : vector<16x1024xf32>
    %c0_55 = arith.constant 0 : index
    %c0_56 = arith.constant 0 : index
    %173 = vector.load %arg4[%c0_55, %c0_56] : memref<8x16xf32, #tpu.memory_space<vmem>>, vector<8x16xf32>
    %cst_57 = arith.constant dense<0.000000e+00> : vector<8x1024xf32>
    %174 = tpu.matmul %173, %172, %cst_57 {dimension_numbers = #tpu.dot_dimension_numbers<[1], [0], [0], [1], [0, 0, 1, 1], [], []>} : vector<8x16xf32>, vector<16x1024xf32>, vector<8x1024xf32> -> vector<8x1024xf32>
    %175 = vector.broadcast %3 : vector<8x1xf32> to vector<8x1024xf32>
    %176 = arith.addf %174, %175 : vector<8x1024xf32>
    %c0_58 = arith.constant 0 : index
    %c0_59 = arith.constant 0 : index
    %177 = vector.load %arg1[%c0_58, %c0_59] : memref<8x1024xf32, #tpu.memory_space<vmem>>, vector<8x1024xf32>
    %178 = arith.addf %176, %177 : vector<8x1024xf32>
    %c0_60 = arith.constant 0 : index
    %c0_61 = arith.constant 0 : index
    %179 = vector.load %arg9[%c0_60, %c0_61] : memref<8x1024xf32, #tpu.memory_space<vmem>>, vector<8x1024xf32>
    tpu.vector_store %arg9[%c0_60, %c0_61], %178 {strides = array<i32>} : memref<8x1024xf32, #tpu.memory_space<vmem>>, vector<8x1024xf32>,
    return
  }
  func.func @transform_0(%arg0: i32) -> (i32, i32) {
    %c0_i32 = arith.constant 0 : i32
    %c0_i32_0 = arith.constant 0 : i32
    return %c0_i32, %arg0 : i32, i32
  }
  func.func @transform_1(%arg0: i32) -> (i32, i32) {
    %c0_i32 = arith.constant 0 : i32
    %c0_i32_0 = arith.constant 0 : i32
    %c0_i32_1 = arith.constant 0 : i32
    return %c0_i32, %c0_i32_0 : i32, i32
  }
  func.func @transform_2(%arg0: i32) -> (i32, i32) {
    %c0_i32 = arith.constant 0 : i32
    %c0_i32_0 = arith.constant 0 : i32
    %c0_i32_1 = arith.constant 0 : i32
    return %c0_i32, %c0_i32_0 : i32, i32
  }
  func.func @transform_3(%arg0: i32) -> (i32, i32) {
    %c0_i32 = arith.constant 0 : i32
    %c0_i32_0 = arith.constant 0 : i32
    %c0_i32_1 = arith.constant 0 : i32
    return %c0_i32, %c0_i32_0 : i32, i32
  }
  func.func @transform_4(%arg0: i32) -> (i32, i32) {
    %c0_i32 = arith.constant 0 : i32
    %c0_i32_0 = arith.constant 0 : i32
    %c0_i32_1 = arith.constant 0 : i32
    return %c0_i32, %c0_i32_0 : i32, i32
  }
  func.func @transform_5(%arg0: i32) -> (i32, i32) {
    %c0_i32 = arith.constant 0 : i32
    %c0_i32_0 = arith.constant 0 : i32
    %c0_i32_1 = arith.constant 0 : i32
    return %c0_i32, %c0_i32_0 : i32, i32
  }
  func.func @transform_6(%arg0: i32) -> (i32, i32) {
    %c0_i32 = arith.constant 0 : i32
    %c0_i32_0 = arith.constant 0 : i32
    %c0_i32_1 = arith.constant 0 : i32
    return %c0_i32, %c0_i32_0 : i32, i32
  }
  func.func @transform_7(%arg0: i32) -> (i32, i32) {
    %c0_i32 = arith.constant 0 : i32
    %c0_i32_0 = arith.constant 0 : i32
    %c0_i32_1 = arith.constant 0 : i32
    return %c0_i32, %c0_i32_0 : i32, i32
  }
  func.func @transform_8(%arg0: i32) -> (i32, i32) {
    %c0_i32 = arith.constant 0 : i32
    %c0_i32_0 = arith.constant 0 : i32
    return %c0_i32, %arg0 : i32, i32
  }
}

</mosaic_0001>

<bundles_post_ra>
// kernel: tpu_custom_call.1
= control target key start
LH: loop header
LB: loop body
LE: loop exit
PB: predicated region body
PF: predicated region fallthrough
CT: control target
= control target key end

     0   :  { %s4821_s0 = inlined_call_operand.hbm [shape: f32[8,2048], index: 0, kind: input, shape index: {}]   ;;  %s4822_s1 = inlined_call_operand.vmem [shape: f32[16,8], index: 1, kind: input, shape index: {}]   ;;  %s4823_s2 = inlined_call_operand.vmem [shape: f32[16,9], index: 2, kind: input, shape index: {}]   ;;  %s4824_s3 = inlined_call_operand.vmem [shape: f32[8,16], index: 3, kind: input, shape index: {}]   ;;  %s4825_s4 = inlined_call_operand.vmem [shape: f32[8,16], index: 4, kind: input, shape index: {}]   ;;  %s4826_s5 = inlined_call_operand.vmem [shape: f32[16,8], index: 5, kind: input, shape index: {}]   ;;  %s4827_s6 = inlined_call_operand.vmem [shape: f32[16,5], index: 6, kind: input, shape index: {}]   ;;  %s4828_s7 = inlined_call_operand.hbm [shape: f32[16,1024], index: 7, kind: input, shape index: {}]   ;;  %s4829_s8 = inlined_call_operand.hbm [shape: f32[8,2048], index: 8, kind: output, shape index: {}]  }
   0x1   :  { %4911 = sst [smem:[#allocation45_spill]] %s4828_s7 }
   0x2   :  { %13 = vsyncpa [#allocation3], 0 }
   0x3   :  { %15 = vsyncpa [#allocation3 + $0x1], 0 }
   0x4   :  { %16 = vsyncpa [#allocation6], 0 }
   0x5   :  { %17 = vsyncpa [#allocation4], 0 }
   0x6   :  { %19 = vsyncpa [#allocation4 + $0x1], 0  ;;  %s2782_s27 = smov 0   ;;  %s2784_s28 = smov 0  }
   0x7   :  { %s2786_s29 = smov 0   ;;  %s2788_s30 = smov 0  }
   0x8 LB: > { %s4912_s7 = sld [smem:[#allocation45_spill]]  ;;  %s2806_s12 = sadd.s32 4294967295, %s2714_s30   ;;  %s2714_s30 = sphi %s2788_s30, %s5065_s30   ;;  %s2710_s29 = sphi %s2786_s29, %s5064_s29   ;;  %s2706_s28 = sphi %s2784_s28, %s5063_s28   ;;  %s2702_s27 = sphi %s2782_s27, %s5062_s27  }
   0x9   : > { %p2410_p0 = scmp.ge.s32.totalorder %s2714_s30, 1  ;;  %p46_p1 = scmp.eq.s32.totalorder %s2806_s12, 0 }
   0xa   : > { %p229_p2 = scmp.lt.s32.totalorder %s2714_s30, 3  ;;  %s2716_s14 = smov [#allocation5]  }
   0xb   : > { %s260_s15 = sshll.u32 %s2716_s14, 4  ;;  %s2717_s16 = smov 1024   ;;  %s261_s15 = int_to_ptr.vmem [resolvable:$true] %s260_s15 }
   0xc   : > { %p2811_p3 = pnand %p2410_p0, %p229_p2  ;;  %s2718_s17 = smov 64  }
   0xd   : > { %s2409_s18 = sadd.s32 4294967294, %s2714_s30   ;;  %s2822_s19 = sadd.s32 1, %s2714_s30  }
   0xe   : > { %s258_s11 = sshll.u32 %s4912_s7, 4  ;;  %p2482_p4 = pneg %p2811_p3  ;;  %s259_s11 = int_to_ptr.hbm [resolvable:$true] %s258_s11 }
   0xf   : > { %s32_s20 = sadd.s32 1, %s2710_s29  ;;  %s29_s21 = ssub.s32 %s2714_s30, %s2822_s19 }
  0x10   : > { %p2483_p6 = pnand %p2482_p4, %p46_p1  ;;  %p39_p7 = scmp.ne.s32.totalorder %s2710_s29, %s2706_s28 }
  0x11   : > { %p30_p8 = scmp.eq.s32.totalorder %s29_s21, 0  ;;  %p40_p9 = scmp.eq.s32.totalorder %s2714_s30, 0 }
  0x12   : > { %2485 = dma.hbm_to_vmem [thread:$0]  (!%p2483_p6), %s259_s11, 2048, %s261_s15, [#allocation6], %s2717_s16, %s2717_s16, %s2718_s17  }
  0x13   : > { %p45_p10 = scmp.ne.s32.totalorder %s2706_s28, %s2702_s27  ;;  %p216_p11 = scmp.eq.s32.totalorder %s2806_s12, 1 }
  0x14   : > { %s2834_s22 = scalar_select %p30_p8, %s2710_s29, %s32_s20  }
  0x15   : > { %p2838_p12 = por %p46_p1, %p45_p10  ;;  %p2842_p13 = por %p216_p11, %p39_p7 }
  0x16   : > { %4914 = sst [smem:[#allocation11_spill]] %s2834_s22  ;;  %p222_p0 = scmp.eq.s32.totalorder %s2409_s18, 1 }
  0x17   : > { %p41_p2 = por %p40_p9, %p39_p7  ;;  %s274_s25 = sand.u32 1, %s2710_s29  }
  0x18   : > { %p2847_p4 = por %p222_p0, %p45_p10  ;;  %p2495_p6 = scmp.lt.s32.totalorder %s2714_s30, 2 }
  0x19   : > { %s2413_s9 = sshll.u32 %s274_s25, 6  ;;  %s2472_s10 = sshll.u32 %s2714_s30, 6 }
  0x1a   : > { %s283_s15 = scalar_lea.hbm %s4821_s0, %s2472_s10  ;;  %s278_s17 = scalar_lea.vmem [#allocation2], %s2413_s9 }
  0x1b   : > { %s285_s16 = sshll.u32 %s283_s15, 4  ;;  %s287_s20 = sshll.u32 %s278_s17, 4  ;;  %s286_s16 = int_to_ptr.hbm [resolvable:$true] %s285_s16  ;;  %s288_s20 = int_to_ptr.vmem [resolvable:$true] %s287_s20 }
  0x1c   : > { %p2856_p8 = pnand %p2495_p6, %p41_p2  ;;  %s275_s21 = scalar_lea.sflag [#allocation3], %s274_s25 }
  0x1d   : > { %s2614_s7 = sshra.s32 %s286_s16, 4  ;;  %s2621_s9 = scalar_lea.hbm %s4821_s0, 128  ;;  %s2615_s7 = int_to_ptr.hbm [resolvable:$true] %s2614_s7 }
  0x1e   : > { %s2616_s22 = scalar_lea.hbm %s2615_s7, 64  ;;  %p2618_p9 = pneg %p2856_p8 }
  0x1f   : > { %p2617_p7 = scmp.ne.s32.totalorder %s2615_s7, %s2616_s22  ;;  %p2622_p0 = scmp.lt.s32.totalorder %s2615_s7, %s4821_s0 }
  0x20   : > { %p2623_p2 = scmp.lt.s32.totalorder %s2621_s9, %s2616_s22 }
  0x21   : > { %p2619_p10 = pnand %p2618_p9, %p2617_p7 }
  0x22   : > { %p2624_p6 = por %p2623_p2, %p2622_p0 }
  0x23   : > { %p2620_p11 = pneg %p2619_p10 }
  0x25   : > { %p2625_p5 = pnand %p2624_p6, %p2620_p11 }
  0x27   : > { %2628 = shalt.err (!%p2625_p5)
}
  0x28   : > { %2489 = dma.hbm_to_vmem [thread:$0]  (!%p2856_p8), %s286_s16, 1024, %s288_s20, %s275_s21  }
  0x29   : > { %296 = sbr.rel (%p2811_p3) target bundleno = 1406 (0x57e), region = 52 }
  0x2e   : > { %s2873_s25 = sand.u32 1, %s2706_s28  }
  0x2f   : > { %s2417_s17 = sshll.u32 %s2873_s25, 6  ;;  %s299_s10 = scalar_lea.sflag [#allocation3], %s2873_s25 }
  0x30   : > { %s2879_s7 = scalar_lea.vmem [#allocation2], %s2417_s17 }
  0x31   : > { %2689 = dma.done.wait (%p2838_p12), %s299_s10, 1024  }
  0x32   : > { %2691 = vsyncadd (%p2838_p12), %s299_s10, 4294966272 }
  0x33   : > { %2693 = dma.done.wait (%p46_p1), [#allocation6], 2048  }
  0x34   : > { %2695 = vsyncadd (%p46_p1), [#allocation6], 4294965248  ;;  %v2719_v0 = vmov 0   ;;  %v4830_v1 = vmov 4   ;;  %v347_v2 = vld [vmem:[%s2879_s7] sm:$0xff]  ;;  %v348_v3 = vld [vmem:[%s2879_s7 + $0x8] sm:$0xff] }
  0x35   : > { %2551 = vset.pattern.permute.xlu0 %v2719_v0  ;;  %2552 = vset.pattern.permute.xlu1 %v4830_v1  ;;  %v349_v4 = vld [vmem:[%s2879_s7 + $0x10] sm:$0xff]  ;;  %vm365_vm0 = vcmask 64512   ;;  %v350_v5 = vld [vmem:[%s2879_s7 + $0x18] sm:$0xff]  ;;  %v344_v6 = vld [vmem:[%s4827_s6 + $0x8] sm:$0xff]  ;;  %v4831_v16 = vmov 1   ;;  %v4835_v17 = vmov 2  }
  0x36   : > { %2553 = vset.pattern.permute.xlu2 %v2719_v0  ;;  %387 = vmatpush.msra.mxu0 %v347_v2  ;;  %v345_v7 = vld [vmem:[%s4822_s1] sm:$0xff]  ;;  %v352_v9 = vld [vmem:[%s2879_s7 + $0x28] sm:$0xff]  ;;  %v353_v10 = vld [vmem:[%s2879_s7 + $0x30] sm:$0xff]  ;;  %s2723_s13 = smov 16   ;;  %s2724_s22 = smov 17   ;;  %vm1842_vm13 = vcmask 130048  }
  0x37   : > { %410 = vmatpush.msra.mxu1 %v348_v3  ;;  %433 = vmatpush.msra.mxu2 %v349_v4  ;;  %v351_v8 = vld [vmem:[%s2879_s7 + $0x20] sm:$0xff]  ;;  %v354_v11 = vld [vmem:[%s2879_s7 + $0x38] sm:$0xff]  ;;  %v2910_v12 = vld [vmem:[%s4823_s2 + $0x8] sm:$0xff]  ;;  %s2725_s23 = smov 15   ;;  %s2726_s16 = smov 1  }
  0x38   : > { %456 = vmatpush.msra.mxu3 %v350_v5  ;;  %362 = vperm.xlu0 %2551, %v344_v6   ;;  %v343_v13 = vld [vmem:[%s4827_s6] sm:$0xff]  ;;  %v346_v14 = vld [vmem:[%s4822_s1 + $0x8] sm:$0xff]  ;;  %s2727_s20 = smov 127   ;;  %s2729_s18 = smov 113  }
  0x39   : > { %2420 = vmatmul.msk.f32.vlgmr.msra.gmra.mxu0 %vm365_vm0, %v345_v7  ;;  %2422 = vmatmul.msk.f32.vlgmr.msra.gmra.mxu1 %vm365_vm0, %v345_v7  ;;  %v2928_v15 = vld [vmem:[%s4823_s2] sm:$0xff]  ;;  %s2731_s21 = smov 112   ;;  %s2733_s14 = smov 111  }
  0x3a   : > { %2424 = vmatmul.msk.f32.vlgmr.msra.gmra.mxu2 %vm365_vm0, %v345_v7  ;;  %2426 = vmatmul.msk.f32.vlgmr.msra.gmra.mxu3 %vm365_vm0, %v345_v7  ;;  %s2664_s15 = scalar_lea.hbm %s4829_s8, 128 }
  0x3b   : > { %479 = vmatpush.msrb.mxu0 %v351_v8  ;;  %502 = vmatpush.msrb.mxu1 %v352_v9 }
  0x3c   : > { %525 = vmatpush.msrb.mxu2 %v353_v10  ;;  %548 = vmatpush.msrb.mxu3 %v354_v11 }
  0x3d   : > { %645 = vperm.xlu1 %2552, %v2910_v12   ;;  %756 = vperm.xlu2 %2553, %v2910_v12  }
  0x40   : > { %357 = vperm.xlu0 %2551, %v343_v13  }
  0x41   : > { %2421 = vmatmul.msk.f32.gmra.mxu0 %vm365_vm0, %v346_v14  ;;  %2423 = vmatmul.msk.f32.gmra.mxu1 %vm365_vm0, %v346_v14 }
  0x42   : > { %2425 = vmatmul.msk.f32.gmra.mxu2 %vm365_vm0, %v346_v14  ;;  %2427 = vmatmul.msk.f32.gmra.mxu3 %vm365_vm0, %v346_v14 }
  0x45   : > { %2555 = vset.pattern.permute.xlu1 %v2719_v0  ;;  %2556 = vset.pattern.permute.xlu2 %v4831_v16 }
  0x46   : > { %752 = vperm.xlu1 %2555, %v2928_v15   ;;  %882 = vperm.xlu2 %2556, %v2910_v12  }
  0x48   : > { %2554 = vset.pattern.permute.xlu0 %v4830_v1 }
  0x49   : > { %2428 = vmatmul.msk.f32.vlgmr.msrb.gmra.mxu0 %vm365_vm0, %v345_v7  ;;  %2430 = vmatmul.msk.f32.vlgmr.msrb.gmra.mxu1 %vm365_vm0, %v345_v7 }
  0x4a   : > { %2432 = vmatmul.msk.f32.vlgmr.msrb.gmra.mxu2 %vm365_vm0, %v345_v7  ;;  %2434 = vmatmul.msk.f32.vlgmr.msrb.gmra.mxu3 %vm365_vm0, %v345_v7 }
  0x4b   : > { %640 = vperm.xlu0 %2554, %v2928_v15  }
  0x4e   : > { %878 = vperm.xlu2 %2556, %v2928_v15  }
  0x51   : > { %2429 = vmatmul.msk.f32.gmra.mxu0 %vm365_vm0, %v346_v14  ;;  %2431 = vmatmul.msk.f32.gmra.mxu1 %vm365_vm0, %v346_v14 }
  0x52   : > { %2433 = vmatmul.msk.f32.gmra.mxu2 %vm365_vm0, %v346_v14  ;;  %2435 = vmatmul.msk.f32.gmra.mxu3 %vm365_vm0, %v346_v14 }
  0x53   : > { %2557 = vset.pattern.permute.xlu0 %v4835_v17 }
  0x54   : > { %1008 = vperm.xlu0 %2557, %v2910_v12  }
  0xaa   : > { %v2946_v18 = vpop.permute.xlu0 %362 }
  0xb2   : > { %v2948_v19 = vpop.permute.xlu0 %357 }
  0xb6   : > { %v389_v20 = vpop.f32.mrf.mxu0  ;;  %v412_v22 = vpop.f32.mrf.mxu1 }
  0xb7   : > { %v390_v21 = vadd.f32 %v389_v20, %v2948_v19  ;;  %v413_v23 = vadd.f32 %v412_v22, %v2948_v19  ;;  %v3021_v20 = vpop.permute.xlu2 %756 }
  0xb9   : > { %v556_v24 = vadd.f32 3.0, %v390_v21  ;;  %v557_v25 = vadd.f32 3.0, %v413_v23 }
  0xbb   : > { %v572_v26 = vmax.f32 %v556_v24, 0.0  ;;  %v573_v27 = vmax.f32 %v557_v25, 0.0 }
  0xbd   : > { %v588_v28 = vmin.f32 %v572_v26, 6.0  ;;  %v435_v29 = vpop.f32.mrf.mxu2  ;;  %v589_v30 = vmin.f32 %v573_v27, 6.0  ;;  %v458_v37 = vpop.f32.mrf.mxu3 }
  0xbe   : > { %v436_v31 = vadd.f32 %v435_v29, %v2948_v19  ;;  %v459_v38 = vadd.f32 %v458_v37, %v2948_v19  ;;  %v392_v46 = vpop.f32.mrf.mxu0  ;;  %v415_v51 = vpop.f32.mrf.mxu1 }
  0xbf   : > { %v604_v32 = vmul.f32 %v588_v28, %v390_v21  ;;  %v605_v33 = vmul.f32 %v589_v30, %v413_v23  ;;  %v393_v48 = vadd.f32 %v392_v46, %v2946_v18  ;;  %v416_v53 = vadd.f32 %v415_v51, %v2946_v18  ;;  %v3032_v29 = vpop.permute.xlu2 %882 }
  0xc0   : > { %v558_v36 = vadd.f32 3.0, %v436_v31  ;;  %v559_v40 = vadd.f32 3.0, %v459_v38 }
  0xc1   : > { %v2953_v34 = vmul.f32 0.16666667, %v604_v32  ;;  %v2955_v35 = vmul.f32 0.16666667, %v605_v33  ;;  %v564_v50 = vadd.f32 3.0, %v393_v48  ;;  %v565_v55 = vadd.f32 3.0, %v416_v53 }
  0xc2   : > { %v574_v39 = vmax.f32 %v558_v36, 0.0  ;;  %v575_v42 = vmax.f32 %v559_v40, 0.0 }
  0xc3   : > { %4919 = vst [vmem:[#allocation12_spill] sm:$0xff] %v2955_v35  ;;  %791 = vrot.lane.b32.xlu0 %v2953_v34, %s2723_s13  ;;  %664 = vrot.lane.b32.xlu1 %v2953_v34, %s2724_s22  ;;  %v580_v52 = vmax.f32 %v564_v50, 0.0  ;;  %v581_v58 = vmax.f32 %v565_v55, 0.0 }
  0xc4   : > { %668 = vrot.lane.b32.xlu2 %v2955_v35, %s2724_s22  ;;  %v590_v41 = vmin.f32 %v574_v39, 6.0  ;;  %v591_v44 = vmin.f32 %v575_v42, 6.0 }
  0xc5   : > { %v596_v54 = vmin.f32 %v580_v52, 6.0  ;;  %v438_v56 = vpop.f32.mrf.mxu2  ;;  %v597_v61 = vmin.f32 %v581_v58, 6.0  ;;  %v461_v63 = vpop.f32.mrf.mxu3 }
  0xc6   : > { %v606_v43 = vmul.f32 %v590_v41, %v436_v31  ;;  %v607_v47 = vmul.f32 %v591_v44, %v459_v38  ;;  %v439_v59 = vadd.f32 %v438_v56, %v2946_v18  ;;  %v462_v3 = vadd.f32 %v461_v63, %v2946_v18  ;;  %v481_v11 = vpop.f32.mrf.mxu0  ;;  %v504_v23 = vpop.f32.mrf.mxu1 }
  0xc7   : > { %v612_v57 = vmul.f32 %v596_v54, %v393_v48  ;;  %v613_v0 = vmul.f32 %v597_v61, %v416_v53  ;;  %v482_v13 = vadd.f32 %v481_v11, %v2948_v19  ;;  %v505_v25 = vadd.f32 %v504_v23, %v2948_v19  ;;  %v3049_v39 = vpop.permute.xlu2 %878  ;;  %v3066_v61 = vpop.permute.xlu0 %640 }
  0xc8   : > { %v2970_v45 = vmul.f32 0.16666667, %v606_v43  ;;  %v2979_v49 = vmul.f32 0.16666667, %v607_v47  ;;  %v566_v62 = vadd.f32 3.0, %v439_v59  ;;  %v567_v6 = vadd.f32 3.0, %v462_v3 }
  0xc9   : > { %v2995_v60 = vmul.f32 0.16666667, %v612_v57  ;;  %v3004_v4 = vmul.f32 0.16666667, %v613_v0  ;;  %v560_v21 = vadd.f32 3.0, %v482_v13  ;;  %v561_v27 = vadd.f32 3.0, %v505_v25 }
  0xca   : > { %4920 = vst [vmem:[#allocation13_spill] sm:$0xff] %v2970_v45  ;;  %v582_v2 = vmax.f32 %v566_v62, 0.0  ;;  %v583_v8 = vmax.f32 %v567_v6, 0.0  ;;  %v3068_v62 = vpop.permute.xlu1 %645 }
  0xcb   : > { %921 = vrot.lane.b32.xlu0 %v2955_v35, %s2725_s23  ;;  %795 = vrot.lane.b32.xlu1 %v2955_v35, %s2723_s13  ;;  %4921 = vst [vmem:[#allocation14_spill] sm:$0xff] %v2979_v49  ;;  %v576_v24 = vmax.f32 %v560_v21, 0.0  ;;  %v577_v31 = vmax.f32 %v561_v27, 0.0 }
  0xcc   : > { %917 = vrot.lane.b32.xlu2 %v2953_v34, %s2725_s23  ;;  %4922 = vst [vmem:[#allocation15_spill] sm:$0xff] %v3004_v4  ;;  %v598_v5 = vmin.f32 %v582_v2, 6.0  ;;  %v599_v10 = vmin.f32 %v583_v8, 6.0 }
  0xcd   : > { %v592_v26 = vmin.f32 %v576_v24, 6.0  ;;  %v550_v28 = vpop.f32.mrf.mxu3  ;;  %v593_v36 = vmin.f32 %v577_v31, 6.0  ;;  %4924 = vst [vmem:[#allocation17_spill] sm:$0xff] %v3049_v39  ;;  %v527_v47 = vpop.f32.mrf.mxu2 }
  0xce   : > { %v614_v7 = vmul.f32 %v598_v5, %v439_v59  ;;  %v615_v14 = vmul.f32 %v599_v10, %v462_v3  ;;  %v551_v32 = vadd.f32 %v550_v28, %v2948_v19  ;;  %v507_v38 = vpop.f32.mrf.mxu1  ;;  %v484_v48 = vpop.f32.mrf.mxu0  ;;  %v528_v50 = vadd.f32 %v527_v47, %v2948_v19 }
  0xcf   : > { %v608_v30 = vmul.f32 %v592_v26, %v482_v13  ;;  %v609_v40 = vmul.f32 %v593_v36, %v505_v25  ;;  %v508_v42 = vadd.f32 %v507_v38, %v2946_v18  ;;  %v485_v52 = vadd.f32 %v484_v48, %v2946_v18  ;;  %v3087_v11 = vpop.permute.xlu0 %1008 }
  0xd0   : > { %v3012_v9 = vmul.f32 0.16666667, %v614_v7  ;;  %v3023_v22 = vmul.f32 0.16666667, %v615_v14  ;;  %v563_v37 = vadd.f32 3.0, %v551_v32  ;;  %v562_v55 = vadd.f32 3.0, %v528_v50 }
  0xd1   : > { %v3041_v33 = vmul.f32 0.16666667, %v608_v30  ;;  %v3052_v43 = vmul.f32 0.16666667, %v609_v40  ;;  %v569_v46 = vadd.f32 3.0, %v508_v42  ;;  %v568_v57 = vadd.f32 3.0, %v485_v52 }
  0xd2   : > { %4923 = vst [vmem:[#allocation16_spill] sm:$0xff] %v3012_v9  ;;  %v579_v41 = vmax.f32 %v563_v37, 0.0  ;;  %v578_v19 = vmax.f32 %v562_v55, 0.0  ;;  %v3085_v10 = vpop.permute.xlu1 %752 }
  0xd3   : > { %1043 = vrot.lane.b32.xlu0 %v2953_v34, %s2726_s16  ;;  %1047 = vrot.lane.b32.xlu1 %v2955_v35, %s2726_s16  ;;  %4925 = vst [vmem:[#allocation18_spill] sm:$0xff] %v3052_v43  ;;  %v585_v53 = vmax.f32 %v569_v46, 0.0  ;;  %v584_v63 = vmax.f32 %v568_v57, 0.0  ;;  %v696_v46 = vlaneseq }
  0xd4   : > { %799 = vrot.lane.b32.xlu2 %v2970_v45, %s2723_s13  ;;  %v595_v44 = vmin.f32 %v579_v41, 6.0  ;;  %v594_v5 = vmin.f32 %v578_v19, 6.0 }
  0xd5   : > { %v601_v58 = vmin.f32 %v585_v53, 6.0  ;;  %v553_v59 = vpop.f32.mrf.mxu3  ;;  %v600_v6 = vmin.f32 %v584_v63, 6.0  ;;  %v530_v27 = vpop.f32.mrf.mxu2  ;;  %v716_v53 = vld [vmem:[#allocation5] ss:$8 sm:$0xf0]  ;;  %v3136_v55 = vand.u32 127, %v696_v46 }
  0xd6   : > { %v611_v51 = vmul.f32 %v595_v44, %v551_v32  ;;  %v554_v2 = vadd.f32 %v553_v59, %v2946_v18  ;;  %v610_v13 = vmul.f32 %v594_v5, %v528_v50  ;;  %v531_v32 = vadd.f32 %v530_v27, %v2946_v18 }
  0xd7   : > { %v617_v0 = vmul.f32 %v601_v58, %v508_v42  ;;  %v616_v14 = vmul.f32 %v600_v6, %v485_v52  ;;  %v715_v52 = vld [vmem:[#allocation5] ss:$8 sm:$0xf]  ;;  %vm698_vm1 = vcmp.lt.s32.totalorder %v3136_v55, 17  ;;  %vm823_vm2 = vcmp.lt.s32.totalorder %v3136_v55, 16 }
  0xd8   : > { %v3064_v56 = vmul.f32 0.16666667, %v611_v51  ;;  %v571_v8 = vadd.f32 3.0, %v554_v2  ;;  %v3093_v24 = vmul.f32 0.16666667, %v610_v13  ;;  %v570_v38 = vadd.f32 3.0, %v531_v32 }
  0xd9   : > { %v3079_v7 = vmul.f32 0.16666667, %v617_v0  ;;  %v3095_v25 = vmul.f32 0.16666667, %v616_v14  ;;  %v3140_v58 = vor.u32 %v716_v53, %v715_v52  ;;  %v4833_v52 = vmov 3  }
  0xda   : > { %4926 = vst [vmem:[#allocation19_spill] sm:$0xff] %v3064_v56  ;;  %v587_v21 = vmax.f32 %v571_v8, 0.0  ;;  %v586_v42 = vmax.f32 %v570_v38, 0.0  ;;  %v841_v0 = vld [vmem:[#allocation5 + $0x1] ss:$8 sm:$0xf]  ;;  %v651_v38 = vmul.f32 %v3066_v61, %v2979_v49  ;;  %2558 = vset.pattern.permute.xlu1 %v4833_v52 }
  0xdb   : > { %672 = vrot.lane.b32.xlu0 %v2970_v45, %s2724_s22  ;;  %676 = vrot.lane.b32.xlu1 %v2979_v49, %s2724_s22  ;;  %4928 = vst [vmem:[#allocation21_spill] sm:$0xff] %v3093_v24  ;;  %v4838_v19 = vperm.slane %v3140_v58, 3  ;;  %vm949_vm3 = vcmp.lt.s32.totalorder %v3136_v55, 15  ;;  %vm1075_vm4 = vcmp.lt.s32.totalorder %v3136_v55, 1  ;;  %vm1201_vm5 = vcmp.lt.s32.totalorder %v3136_v55, 127 }
  0xdc   : > { %929 = vrot.lane.b32.xlu2 %v2979_v49, %s2725_s23  ;;  %v603_v26 = vmin.f32 %v587_v21, 6.0  ;;  %v602_v44 = vmin.f32 %v586_v42, 6.0  ;;  %vm1327_vm6 = vcmp.lt.s32.totalorder %v3136_v55, 113  ;;  %vm1453_vm7 = vcmp.lt.s32.totalorder %v3136_v55, 112 }
  0xdd   : > { %vm1579_vm8 = vcmp.lt.s32.totalorder %v3136_v55, 111  ;;  %vm1785_vm9 = vcmp.eq.s32.totalorder %v3136_v55, 0  ;;  %vm1800_vm10 = vcmp.eq.s32.totalorder %v3136_v55, 1  ;;  %vm1815_vm11 = vcmp.eq.s32.totalorder %v3136_v55, 2 }
  0xde   : > { %v619_v28 = vmul.f32 %v603_v26, %v554_v2  ;;  %v618_v50 = vmul.f32 %v602_v44, %v531_v32  ;;  %v842_v2 = vld [vmem:[#allocation5 + $0x1] ss:$8 sm:$0xf0]  ;;  %vm1830_vm12 = vcmp.eq.s32.totalorder %v3136_v55, 3 }
  0xdf   : > { %v3160_v8 = vor.u32 %v842_v2, %v841_v0 }
  0xe0   : > { %v3110_v37 = vmul.f32 0.16666667, %v619_v28  ;;  %v3138_v57 = vmul.f32 0.16666667, %v618_v50 }
  0xe1   : > { %v4837_v14 = vperm.slane %v3160_v8, 3 }
  0xe2   : > { %4936 = vst [vmem:[#allocation29_spill] sm:$0xff] %v3138_v57 }
  0xe3   : > { %803 = vrot.lane.b32.xlu0 %v2979_v49, %s2723_s13  ;;  %925 = vrot.lane.b32.xlu1 %v2970_v45, %s2725_s23 }
  0xe4   : > { %1051 = vrot.lane.b32.xlu2 %v2970_v45, %s2726_s16 }
  0xeb   : > { %1055 = vrot.lane.b32.xlu0 %v2979_v49, %s2726_s16  ;;  %666 = vrot.lane.b32.xlu1 %v2995_v60, %s2724_s22 }
  0xec   : > { %793 = vrot.lane.b32.xlu2 %v2995_v60, %s2723_s13 }
  0xf3   : > { %797 = vrot.lane.b32.xlu0 %v3004_v4, %s2723_s13  ;;  %670 = vrot.lane.b32.xlu1 %v3004_v4, %s2724_s22 }
  0xf4   : > { %923 = vrot.lane.b32.xlu2 %v3004_v4, %s2725_s23 }
  0xfb   : > { %1045 = vrot.lane.b32.xlu0 %v2995_v60, %s2726_s16  ;;  %919 = vrot.lane.b32.xlu1 %v2995_v60, %s2725_s23 }
  0xfc   : > { %674 = vrot.lane.b32.xlu2 %v3012_v9, %s2724_s22 }
 0x103   : > { %927 = vrot.lane.b32.xlu0 %v3012_v9, %s2725_s23  ;;  %1049 = vrot.lane.b32.xlu1 %v3004_v4, %s2726_s16 }
 0x104   : > { %678 = vrot.lane.b32.xlu2 %v3023_v22, %s2724_s22 }
 0x10b   : > { %1057 = vrot.lane.b32.xlu0 %v3023_v22, %s2726_s16  ;;  %801 = vrot.lane.b32.xlu1 %v3012_v9, %s2723_s13 }
 0x10c   : > { %805 = vrot.lane.b32.xlu2 %v3023_v22, %s2723_s13 }
 0x113   : > { %680 = vrot.lane.b32.xlu0 %v3041_v33, %s2724_s22  ;;  %931 = vrot.lane.b32.xlu1 %v3023_v22, %s2725_s23 }
 0x114   : > { %1053 = vrot.lane.b32.xlu2 %v3012_v9, %s2726_s16 }
 0x11b   : > { %811 = vrot.lane.b32.xlu0 %v3052_v43, %s2723_s13  ;;  %684 = vrot.lane.b32.xlu1 %v3052_v43, %s2724_s22 }
 0x11c   : > { %807 = vrot.lane.b32.xlu2 %v3041_v33, %s2723_s13 }
 0x11e   : > { %v3062_v54 = vpop.permute.xlu2 %668 }
 0x123   : > { %819 = vrot.lane.b32.xlu0 %v3064_v56, %s2723_s13  ;;  %937 = vrot.lane.b32.xlu1 %v3052_v43, %s2725_s23 }
 0x124   : > { %933 = vrot.lane.b32.xlu2 %v3041_v33, %s2725_s23 }
 0x126   : > { %v3077_v3 = vpop.permute.xlu2 %917 }
 0x127   : > { %4927 = vst [vmem:[#allocation20_spill] sm:$0xff] %v3077_v3 }
 0x12b   : > { %686 = vrot.lane.b32.xlu0 %v3079_v7, %s2724_s22  ;;  %692 = vrot.lane.b32.xlu1 %v3064_v56, %s2724_s22 }
 0x12c   : > { %945 = vrot.lane.b32.xlu2 %v3064_v56, %s2725_s23 }
 0x12e   : > { %v3091_v23 = vpop.permute.xlu2 %799 }
 0x133   : > { %935 = vrot.lane.b32.xlu0 %v3095_v25, %s2725_s23  ;;  %688 = vrot.lane.b32.xlu1 %v3093_v24, %s2724_s22 }
 0x134   : > { %682 = vrot.lane.b32.xlu2 %v3095_v25, %s2724_s22 }
 0x135   : > { %v3103_v30 = vpop.permute.xlu1 %664  ;;  %v3105_v31 = vpop.permute.xlu0 %791 }
 0x136   : > { %4929 = vst [vmem:[#allocation22_spill] sm:$0xff] %v3103_v30  ;;  %v3108_v36 = vpop.permute.xlu2 %929 }
 0x137   : > { %4930 = vst [vmem:[#allocation23_spill] sm:$0xff] %v3105_v31 }
 0x138   : > { %4931 = vst [vmem:[#allocation24_spill] sm:$0xff] %v3108_v36 }
 0x13b   : > { %694 = vrot.lane.b32.xlu0 %v3110_v37, %s2724_s22  ;;  %815 = vrot.lane.b32.xlu1 %v3093_v24, %s2723_s13 }
 0x13c   : > { %813 = vrot.lane.b32.xlu2 %v3079_v7, %s2723_s13 }
 0x13d   : > { %v3118_v40 = vpop.permute.xlu1 %795  ;;  %v3120_v41 = vpop.permute.xlu0 %921 }
 0x13e   : > { %4932 = vst [vmem:[#allocation25_spill] sm:$0xff] %v3120_v41  ;;  %v3122_v18 = vpop.permute.xlu2 %1051 }
 0x13f   : > { %4933 = vst [vmem:[#allocation26_spill] sm:$0xff] %v3122_v18 }
 0x143   : > { %821 = vrot.lane.b32.xlu0 %v3110_v37, %s2723_s13  ;;  %809 = vrot.lane.b32.xlu1 %v3095_v25, %s2723_s13 }
 0x144   : > { %1065 = vrot.lane.b32.xlu2 %v3079_v7, %s2726_s16 }
 0x145   : > { %v3130_v47 = vpop.permute.xlu1 %1047  ;;  %v3132_v48 = vpop.permute.xlu0 %1043 }
 0x146   : > { %4934 = vst [vmem:[#allocation27_spill] sm:$0xff] %v3130_v47  ;;  %v3134_v51 = vpop.permute.xlu2 %793 }
 0x147   : > { %4935 = vst [vmem:[#allocation28_spill] sm:$0xff] %v3132_v48  ;;  %v657_v48 = vmul.f32 %v3068_v62, %v3004_v4 }
 0x14b   : > { %1071 = vrot.lane.b32.xlu0 %v3064_v56, %s2726_s16  ;;  %939 = vrot.lane.b32.xlu1 %v3079_v7, %s2725_s23 }
 0x14c   : > { %690 = vrot.lane.b32.xlu2 %v3138_v57, %s2724_s22 }
 0x14d   : > { %v3149_v59 = vpop.permute.xlu1 %676  ;;  %v3152_v63 = vpop.permute.xlu0 %672 }
 0x14e   : > { %v3154_v5 = vpop.permute.xlu2 %923  ;;  %v707_v6 = vsel %vm698_vm1, %v3152_v63, %v3149_v59 }
 0x14f   : > { %v738_v13 = vmul.f32 %v4838_v19, %v707_v6 }
 0x151   : > { %v762_v21 = vmul.f32 %v3085_v10, %v738_v13  ;;  %v4842_v13 = vperm.slane %v3140_v58, 1 }
 0x153   : > { %1179 = vrot.lane.b32.xlu0 %v3012_v9, %s2727_s20  ;;  %1061 = vrot.lane.b32.xlu1 %v3095_v25, %s2726_s16  ;;  %v778_v44 = vadd.f32 %v762_v21, %v651_v38  ;;  %v4841_v21 = vperm.slane %v3160_v8, 1 }
 0x154   : > { %947 = vrot.lane.b32.xlu2 %v3110_v37, %s2725_s23 }
 0x155   : > { %v3173_v26 = vpop.permute.xlu1 %925  ;;  %v804_v27 = vpop.permute.xlu0 %803 }
 0x156   : > { %4937 = vst [vmem:[#allocation30_spill] sm:$0xff] %v3173_v26  ;;  %v675_v28 = vpop.permute.xlu2 %674  ;;  %v832_v32 = vsel %vm823_vm2, %v3091_v23, %v804_v27 }
 0x157   : > { %v864_v42 = vmul.f32 %v4837_v14, %v832_v32 }
 0x159   : > { %v888_v46 = vmul.f32 %v3049_v39, %v864_v42  ;;  %v967_v42 = vld [vmem:[#allocation5 + $0x2] ss:$8 sm:$0xf] }
 0x15b   : > { %v3183_v50 = vadd.f32 %v888_v46, %v778_v44  ;;  %1004 = vperm.xlu0 %2557, %v2928_v15   ;;  %817 = vrot.lane.b32.xlu1 %v3138_v57, %s2723_s13  ;;  %v968_v44 = vld [vmem:[#allocation5 + $0x2] ss:$8 sm:$0xf0]  ;;  %s4770_s13 = scalar_lea.vmem [#allocation7], %s2417_s17  ;;  %s2473_s17 = sshll.u32 %s2806_s12, 6 }
 0x15c   : > { %943 = vrot.lane.b32.xlu2 %v3138_v57, %s2725_s23  ;;  %v3223_v19 = vor.u32 %v968_v44, %v967_v42 }
 0x15d   : > { %4938 = vst [vmem:[#allocation31_spill] sm:$0xff] %v3183_v50  ;;  %v3191_v53 = vpop.permute.xlu1 %666  ;;  %v3193_v0 = vpop.permute.xlu0 %1055 }
 0x15e   : > { %4939 = vst [vmem:[#allocation32_spill] sm:$0xff] %v3193_v0  ;;  %v3195_v2 = vpop.permute.xlu2 %678 }
 0x15f   : > { %v708_v6 = vsel %vm698_vm1, %v675_v28, %v3195_v2 }
 0x163   : > { %1059 = vrot.lane.b32.xlu0 %v3041_v33, %s2726_s16  ;;  %1073 = vrot.lane.b32.xlu1 %v3110_v37, %s2726_s16 }
 0x164   : > { %1175 = vrot.lane.b32.xlu2 %v3004_v4, %s2727_s20  ;;  %2559 = vset.pattern.permute.xlu0 %v4833_v52 }
 0x165   : > { %v671_v32 = vpop.permute.xlu1 %670  ;;  %v798_v38 = vpop.permute.xlu0 %797 }
 0x166   : > { %v3209_v46 = vpop.permute.xlu2 %805  ;;  %v710_v1 = vsel %vm698_vm1, %v671_v32, %v675_v28  ;;  %v712_v16 = vsel %vm698_vm1, %v3191_v53, %v671_v32  ;;  %v837_v52 = vsel %vm823_vm2, %v3134_v51, %v798_v38 }
 0x167   : > { %v744_v17 = vmul.f32 %v4842_v13, %v712_v16  ;;  %v870_v14 = vmul.f32 %v4841_v21, %v837_v52  ;;  %v4843_v16 = vperm.slane %v3223_v19, 1 }
 0x169   : > { %v768_v28 = vmul.f32 %v3021_v20, %v744_v17  ;;  %v894_v32 = vmul.f32 %v3032_v29, %v870_v14 }
 0x16b   : > { %v784_v47 = vadd.f32 %v768_v28, %v657_v48  ;;  %1169 = vrot.lane.b32.xlu0 %v2953_v34, %s2727_s20  ;;  %1171 = vrot.lane.b32.xlu1 %v2995_v60, %s2727_s20 }
 0x16c   : > { %1187 = vrot.lane.b32.xlu2 %v3095_v25, %s2727_s20 }
 0x16d   : > { %v910_v52 = vadd.f32 %v894_v32, %v784_v47  ;;  %v3237_v42 = vpop.permute.xlu1 %919  ;;  %v3239_v17 = vpop.permute.xlu0 %1045 }
 0x16e   : > { %4940 = vst [vmem:[#allocation33_spill] sm:$0xff] %v3239_v17  ;;  %v3241_v48 = vpop.permute.xlu2 %1053  ;;  %v963_v14 = vsel %vm949_vm3, %v3237_v42, %v3154_v5 }
 0x16f   : > { %4941 = vst [vmem:[#allocation34_spill] sm:$0xff] %v3241_v48  ;;  %v996_v44 = vmul.f32 %v4843_v16, %v963_v14  ;;  %v4945_v16 = vperm.slane %v3140_v58, 3 }
 0x171   : > { %v1020_v28 = vmul.f32 %v3087_v11, %v996_v44  ;;  %v4846_v44 = vperm.slane %v3140_v58, 2  ;;  %v746_v18 = vmul.f32 %v4945_v16, %v708_v6 }
 0x173   : > { %v3250_v21 = vadd.f32 %v1020_v28, %v910_v52  ;;  %1181 = vrot.lane.b32.xlu0 %v2979_v49, %s2727_s20  ;;  %1183 = vrot.lane.b32.xlu1 %v3023_v22, %s2727_s20  ;;  %v745_v0 = vmul.f32 %v4846_v44, %v710_v1  ;;  %v658_v1 = vmul.f32 %v3068_v62, %v3012_v9 }
 0x174   : > { %941 = vrot.lane.b32.xlu2 %v3093_v24, %s2725_s23 }
 0x175   : > { %4942 = vst [vmem:[#allocation35_spill] sm:$0xff] %v3250_v21  ;;  %v3259_v47 = vpop.permute.xlu1 %1049  ;;  %v928_v32 = vpop.permute.xlu0 %927  ;;  %v4860_v21 = vperm.slane %v3223_v19, 2 }
 0x176   : > { %4943 = vst [vmem:[#allocation36_spill] sm:$0xff] %v3259_v47  ;;  %v3261_v13 = vpop.permute.xlu2 %807  ;;  %v3267_v52 = vsel %vm1075_vm4, %v3259_v47, %v3241_v48  ;;  %v961_v14 = vsel %vm949_vm3, %v3154_v5, %v928_v32  ;;  %v4948_v47 = vperm.slane %v3160_v8, 3 }
 0x177   : > { %4944 = vst [vmem:[#allocation37_spill] sm:$0xff] %v3267_v52  ;;  %v830_v28 = vsel %vm823_vm2, %v804_v27, %v3261_v13  ;;  %v770_v27 = vmul.f32 %v3021_v20, %v746_v18  ;;  %v769_v52 = vmul.f32 %v3021_v20, %v745_v0  ;;  %v659_v18 = vmul.f32 %v3068_v62, %v3023_v22 }
 0x178   : > { %v997_v0 = vmul.f32 %v4860_v21, %v961_v14 }
 0x179   : > { %v785_v26 = vadd.f32 %v769_v52, %v658_v1 }
 0x17b   : > { %1195 = vrot.lane.b32.xlu0 %v3138_v57, %s2727_s20  ;;  %1134 = vperm.xlu1 %2558, %v2910_v12  }
 0x17c   : > { %1069 = vrot.lane.b32.xlu2 %v3138_v57, %s2726_s16  ;;  %v786_v57 = vadd.f32 %v770_v27, %v659_v18  ;;  %v652_v27 = vmul.f32 %v3066_v61, %v3041_v33 }
 0x17d   : > { %v802_v6 = vpop.permute.xlu1 %801  ;;  %v3289_v16 = vpop.permute.xlu0 %1057 }
 0x17e   : > { %4946 = vst [vmem:[#allocation38_spill] sm:$0xff] %v3289_v16  ;;  %v3293_v44 = vpop.permute.xlu2 %933  ;;  %v833_v48 = vsel %vm823_vm2, %v802_v6, %v3209_v46  ;;  %v835_v5 = vsel %vm823_vm2, %v798_v38, %v802_v6  ;;  %v4947_v16 = vperm.slane %v3160_v8, 2  ;;  %v4862_v38 = vperm.slane %v3160_v8, 4 }
 0x17f   : > { %v872_v50 = vmul.f32 %v4948_v47, %v833_v48  ;;  %v1021_v6 = vmul.f32 %v3087_v11, %v997_v0  ;;  %v4864_v48 = vperm.slane %v3140_v58, 4  ;;  %v2730_v0 = vmov 5  }
 0x180   : > { %v871_v17 = vmul.f32 %v4947_v16, %v835_v5  ;;  %v865_v52 = vmul.f32 %v4862_v38, %v830_v28  ;;  %v4863_v16 = vperm.slane %v3140_v58, 5  ;;  %v648_v38 = vmul.f32 %v3066_v61, %v2953_v34 }
 0x181   : > { %v896_v3 = vmul.f32 %v3032_v29, %v872_v50  ;;  %v4859_v50 = vperm.slane %v3223_v19, 3 }
 0x182   : > { %v895_v36 = vmul.f32 %v3032_v29, %v871_v17  ;;  %v889_v1 = vmul.f32 %v3049_v39, %v865_v52 }
 0x183   : > { %v912_v49 = vadd.f32 %v896_v3, %v786_v57  ;;  %1305 = vrot.lane.b32.xlu0 %v3012_v9, %s2729_s18  ;;  %1063 = vrot.lane.b32.xlu1 %v3052_v43, %s2726_s16 }
 0x184   : > { %v911_v41 = vadd.f32 %v895_v36, %v785_v26  ;;  %1177 = vrot.lane.b32.xlu2 %v2970_v45, %s2727_s20  ;;  %2560 = vset.pattern.permute.xlu1 %v2730_v0 }
 0x185   : > { %v3322_v47 = vpop.permute.xlu1 %931  ;;  %v681_v36 = vpop.permute.xlu0 %680 }
 0x186   : > { %v3320_v17 = vadd.f32 %v1021_v6, %v911_v41  ;;  %v3324_v3 = vpop.permute.xlu2 %945  ;;  %v959_v57 = vsel %vm949_vm3, %v928_v32, %v3322_v47  ;;  %v705_v26 = vsel %vm698_vm1, %v3149_v59, %v681_v36  ;;  %v4861_v59 = vperm.slane %v3160_v8, 5 }
 0x187   : > { %v998_v41 = vmul.f32 %v4859_v50, %v959_v57  ;;  %v739_v14 = vmul.f32 %v4864_v48, %v705_v26 }
 0x188   : > { %4949 = vst [vmem:[#allocation39_spill] sm:$0xff] %v3320_v17 }
 0x189   : > { %v1022_v5 = vmul.f32 %v3087_v11, %v998_v41  ;;  %v763_v32 = vmul.f32 %v3085_v10, %v739_v14 }
 0x18b   : > { %v3345_v28 = vadd.f32 %v1022_v5, %v912_v49  ;;  %v779_v18 = vadd.f32 %v763_v32, %v652_v27  ;;  %1130 = vperm.xlu0 %2559, %v2928_v15   ;;  %1173 = vrot.lane.b32.xlu1 %v2955_v35, %s2727_s20  ;;  %v653_v27 = vmul.f32 %v3066_v61, %v3052_v43 }
 0x18c   : > { %1191 = vrot.lane.b32.xlu2 %v3079_v7, %s2727_s20 }
 0x18d   : > { %4950 = vst [vmem:[#allocation40_spill] sm:$0xff] %v3345_v28  ;;  %v3352_v6 = vadd.f32 %v889_v1, %v779_v18  ;;  %v685_v57 = vpop.permute.xlu1 %684  ;;  %v3354_v26 = vpop.permute.xlu0 %811 }
 0x18e   : > { %v683_v41 = vpop.permute.xlu2 %682  ;;  %v703_v49 = vsel %vm698_vm1, %v681_v36, %v685_v57  ;;  %v828_v15 = vsel %vm823_vm2, %v3261_v13, %v3354_v26 }
 0x18f   : > { %4951 = vst [vmem:[#allocation41_spill] sm:$0xff] %v3352_v6  ;;  %v3365_v52 = vsel %vm698_vm1, %v3195_v2, %v683_v41  ;;  %v740_v14 = vmul.f32 %v4863_v16, %v703_v49  ;;  %v866_v5 = vmul.f32 %v4861_v59, %v828_v15  ;;  %v4866_v15 = vperm.slane %v3160_v8, 0 }
 0x190   : > { %v4878_v6 = vperm.slane %v3223_v19, 4 }
 0x191   : > { %v764_v36 = vmul.f32 %v3085_v10, %v740_v14  ;;  %v890_v1 = vmul.f32 %v3049_v39, %v866_v5  ;;  %v719_v14 = vperm.slane %v3140_v58, 0 }
 0x193   : > { %v780_v32 = vadd.f32 %v764_v36, %v653_v27  ;;  %1199 = vrot.lane.b32.xlu0 %v3110_v37, %s2727_s20  ;;  %1185 = vrot.lane.b32.xlu1 %v3041_v33, %s2727_s20 }
 0x194   : > { %1301 = vrot.lane.b32.xlu2 %v3004_v4, %s2729_s18 }
 0x195   : > { %v3381_v2 = vadd.f32 %v890_v1, %v780_v32  ;;  %v3383_v13 = vpop.permute.xlu1 %937  ;;  %v820_v18 = vpop.permute.xlu0 %819 }
 0x196   : > { %v3385_v0 = vpop.permute.xlu2 %813  ;;  %v3391_v49 = vsel %vm949_vm3, %v3293_v44, %v3383_v13  ;;  %v838_v5 = vsel %vm823_vm2, %v820_v18, %v3105_v31 }
 0x197   : > { %4952 = vst [vmem:[#allocation42_spill] sm:$0xff] %v3381_v2  ;;  %v861_v21 = vmul.f32 %v4866_v15, %v838_v5 }
 0x199   : > { %v885_v48 = vmul.f32 %v3049_v39, %v861_v21 }
 0x19b   : > { %1303 = vrot.lane.b32.xlu0 %v2970_v45, %s2729_s18  ;;  %1297 = vrot.lane.b32.xlu1 %v2995_v60, %s2729_s18 }
 0x19c   : > { %1313 = vrot.lane.b32.xlu2 %v3095_v25, %s2729_s18 }
 0x19d   : > { %v693_v27 = vpop.permute.xlu1 %692  ;;  %v687_v36 = vpop.permute.xlu0 %686 }
 0x19e   : > { %v3404_v32 = vpop.permute.xlu2 %1065  ;;  %v713_v1 = vsel %vm698_vm1, %v693_v27, %v3103_v30  ;;  %v704_v50 = vsel %vm698_vm1, %v683_v41, %v687_v36  ;;  %v4868_v41 = vperm.slane %v3140_v58, 6 }
 0x19f   : > { %v735_v59 = vmul.f32 %v719_v14, %v713_v1  ;;  %v4867_v1 = vperm.slane %v3140_v58, 7 }
 0x1a1   : > { %v759_v16 = vmul.f32 %v3085_v10, %v735_v59 }
 0x1a3   : > { %v775_v31 = vadd.f32 %v759_v16, %v648_v38  ;;  %1317 = vrot.lane.b32.xlu0 %v3079_v7, %s2729_s18  ;;  %1309 = vrot.lane.b32.xlu1 %v3023_v22, %s2729_s18 }
 0x1a4   : > { %1067 = vrot.lane.b32.xlu2 %v3093_v24, %s2726_s16  ;;  %s2324_s16 = scalar_lea.hbm %s4829_s8, %s2473_s17 }
 0x1a5   : > { %v3424_v5 = vadd.f32 %v885_v48, %v775_v31  ;;  %v689_v15 = vpop.permute.xlu1 %688  ;;  %v3427_v59 = vpop.permute.xlu0 %935  ;;  %s2328_s12 = sshll.u32 %s2324_s16, 4  ;;  %s2329_s12 = int_to_ptr.hbm [resolvable:$true] %s2328_s12 }
 0x1a6   : > { %v691_v21 = vpop.permute.xlu2 %690  ;;  %v699_v38 = vsel %vm698_vm1, %v689_v15, %v693_v27  ;;  %v701_v16 = vsel %vm698_vm1, %v685_v57, %v689_v15  ;;  %v957_v28 = vsel %vm949_vm3, %v3322_v47, %v3427_v59  ;;  %v4876_v57 = vperm.slane %v3160_v8, 6 }
 0x1a7   : > { %4953 = vst [vmem:[#allocation43_spill] sm:$0xff] %v3424_v5  ;;  %v3439_v31 = vsel %vm698_vm1, %v687_v36, %v691_v21  ;;  %v741_v48 = vmul.f32 %v4868_v41, %v701_v16  ;;  %v742_v17 = vmul.f32 %v4867_v1, %v699_v38  ;;  %v654_v27 = vmul.f32 %v3066_v61, %v3093_v24 }
 0x1a9   : > { %v765_v15 = vmul.f32 %v3085_v10, %v741_v48  ;;  %v766_v36 = vmul.f32 %v3085_v10, %v742_v17  ;;  %v655_v17 = vmul.f32 %v3066_v61, %v3064_v56 }
 0x1ab   : > { %1427 = vrot.lane.b32.xlu0 %v3004_v4, %s2731_s21  ;;  %1260 = vperm.xlu1 %2560, %v2910_v12   ;;  %v781_v5 = vadd.f32 %v765_v15, %v654_v27  ;;  %v782_v9 = vadd.f32 %v766_v36, %v655_v17 }
 0x1ac   : > { %1193 = vrot.lane.b32.xlu2 %v3093_v24, %s2727_s20 }
 0x1ad   : > { %v816_v38 = vpop.permute.xlu1 %815  ;;  %v695_v16 = vpop.permute.xlu0 %694 }
 0x1ae   : > { %v948_v1 = vpop.permute.xlu2 %947  ;;  %v824_v12 = vsel %vm823_vm2, %v816_v38, %v820_v18  ;;  %v826_v41 = vsel %vm823_vm2, %v3354_v26, %v816_v38  ;;  %v3463_v48 = vsel %vm698_vm1, %v691_v21, %v695_v16  ;;  %v714_v47 = vsel %vm698_vm1, %v695_v16, %v3191_v53 }
 0x1af   : > { %v867_v30 = vmul.f32 %v4876_v57, %v826_v41  ;;  %v4954_v18 = vperm.slane %v3160_v8, 7  ;;  %v4955_v26 = vperm.slane %v3140_v58, 4  ;;  %v4956_v21 = vperm.slane %v3140_v58, 5 }
 0x1b0   : > { %v743_v2 = vmul.f32 %v719_v14, %v714_v47  ;;  %v965_v41 = vsel %vm949_vm3, %v948_v1, %v3237_v42  ;;  %v661_v42 = vmul.f32 %v3068_v62, %v3079_v7  ;;  %v999_v14 = vmul.f32 %v4878_v6, %v957_v28 }
 0x1b1   : > { %v868_v24 = vmul.f32 %v4954_v18, %v824_v12  ;;  %v747_v38 = vmul.f32 %v4955_v26, %v3365_v52  ;;  %v748_v4 = vmul.f32 %v4956_v21, %v704_v50  ;;  %v891_v53 = vmul.f32 %v3049_v39, %v867_v30 }
 0x1b2   : > { %v4877_v30 = vperm.slane %v3223_v19, 0  ;;  %v656_v52 = vmul.f32 %v3068_v62, %v2995_v60 }
 0x1b3   : > { %v892_v16 = vmul.f32 %v3049_v39, %v868_v24  ;;  %v3485_v12 = vadd.f32 %v891_v53, %v781_v5  ;;  %1439 = vrot.lane.b32.xlu0 %v3095_v25, %s2731_s21  ;;  %1189 = vrot.lane.b32.xlu1 %v3052_v43, %s2727_s20  ;;  %v771_v24 = vmul.f32 %v3021_v20, %v747_v38  ;;  %v4957_v38 = vperm.slane %v3160_v8, 4 }
 0x1b4   : > { %v772_v50 = vmul.f32 %v3021_v20, %v748_v4  ;;  %1299 = vrot.lane.b32.xlu2 %v2955_v35, %s2729_s18  ;;  %v767_v5 = vmul.f32 %v3021_v20, %v743_v2  ;;  %v4875_v4 = vmov 6   ;;  %v995_v27 = vmul.f32 %v4877_v30, %v965_v41 }
 0x1b5   : > { %v3487_v18 = vadd.f32 %v892_v16, %v782_v9  ;;  %v660_v9 = vmul.f32 %v3068_v62, %v3095_v25  ;;  %v810_v47 = vpop.permute.xlu1 %809  ;;  %v3507_v15 = vpop.permute.xlu0 %821  ;;  %2561 = vset.pattern.permute.xlu2 %v4875_v4  ;;  %v4958_v53 = vperm.slane %v3160_v8, 5  ;;  %v4959_v41 = vperm.slane %v3160_v8, 0 }
 0x1b6   : > { %v944_v36 = vpop.permute.xlu2 %943  ;;  %v829_v17 = vsel %vm823_vm2, %v810_v47, %v3385_v0  ;;  %v831_v28 = vsel %vm823_vm2, %v3209_v46, %v810_v47  ;;  %v839_v2 = vsel %vm823_vm2, %v3507_v15, %v3134_v51  ;;  %v788_v46 = vadd.f32 %v772_v50, %v661_v42 }
 0x1b7   : > { %v3524_v26 = vsel %vm949_vm3, %v944_v36, %v948_v1  ;;  %v873_v21 = vmul.f32 %v4957_v38, %v831_v28  ;;  %v874_v16 = vmul.f32 %v4958_v53, %v829_v17  ;;  %v869_v4 = vmul.f32 %v4959_v41, %v839_v2 }
 0x1b8   : > { %v787_v57 = vadd.f32 %v771_v24, %v660_v9  ;;  %v783_v47 = vadd.f32 %v767_v5, %v656_v52  ;;  %v1023_v1 = vmul.f32 %v3087_v11, %v999_v14  ;;  %v1019_v35 = vmul.f32 %v3087_v11, %v995_v27 }
 0x1b9   : > { %v897_v30 = vmul.f32 %v3032_v29, %v873_v21  ;;  %v898_v51 = vmul.f32 %v3032_v29, %v874_v16  ;;  %v893_v6 = vmul.f32 %v3032_v29, %v869_v4  ;;  %v709_v24 = vsel %vm698_vm1, %v3062_v54, %v3152_v63 }
 0x1ba   : > { %v976_v50 = vperm.slane %v3223_v19, 5  ;;  %v4961_v14 = vperm.slane %v3140_v58, 2  ;;  %v4962_v27 = vperm.slane %v3160_v8, 2  ;;  %v4964_v21 = vperm.slane %v3140_v58, 6 }
 0x1bb   : > { %v913_v28 = vadd.f32 %v897_v30, %v787_v57  ;;  %v914_v38 = vadd.f32 %v898_v51, %v788_v46  ;;  %v909_v43 = vadd.f32 %v893_v6, %v783_v47  ;;  %1197 = vrot.lane.b32.xlu0 %v3064_v56, %s2727_s20  ;;  %1295 = vrot.lane.b32.xlu1 %v2953_v34, %s2729_s18  ;;  %v4965_v16 = vperm.slane %v3140_v58, 7  ;;  %s2326_s20 = sshll.u32 %s4770_s13, 4  ;;  %s2327_s20 = int_to_ptr.vmem [resolvable:$true] %s2326_s20 }
 0x1bc   : > { %1311 = vrot.lane.b32.xlu2 %v3041_v33, %s2729_s18  ;;  %v737_v5 = vmul.f32 %v4961_v14, %v709_v24  ;;  %v749_v53 = vmul.f32 %v4964_v21, %v3439_v31  ;;  %v4970_v14 = vld [vmem:[#allocation30_spill] sm:$0xff]  ;;  %v4971_v21 = vld [vmem:[#allocation29_spill] sm:$0xff] }
 0x1bd   : > { %v3548_v52 = vadd.f32 %v1023_v1, %v913_v28  ;;  %v3550_v57 = vadd.f32 %v1019_v35, %v909_v43  ;;  %v940_v6 = vpop.permute.xlu1 %939  ;;  %v3552_v30 = vpop.permute.xlu0 %1071  ;;  %v834_v35 = vsel %vm823_vm2, %v3118_v40, %v3091_v23  ;;  %v650_v23 = vmul.f32 %v3066_v61, %v2970_v45  ;;  %v4967_v28 = vld [vmem:[#allocation25_spill] sm:$0xff] }
 0x1be   : > { %4960 = vst [vmem:[#allocation44_spill] sm:$0xff] %v3552_v30  ;;  %v3554_v9 = vpop.permute.xlu2 %1175  ;;  %v953_v42 = vsel %vm949_vm3, %v940_v6, %v944_v36  ;;  %v955_v63 = vsel %vm949_vm3, %v3427_v59, %v940_v6  ;;  %v863_v17 = vmul.f32 %v4962_v27, %v834_v35  ;;  %v761_v36 = vmul.f32 %v3085_v10, %v737_v5  ;;  %v4963_v59 = vld [vmem:[#allocation14_spill] sm:$0xff] }
 0x1bf   : > { %v1000_v4 = vmul.f32 %v976_v50, %v955_v63  ;;  %v750_v41 = vmul.f32 %v4965_v16, %v3463_v48  ;;  %v4969_v63 = vld [vmem:[#allocation24_spill] sm:$0xff]  ;;  %v662_v16 = vmul.f32 %v3068_v62, %v4971_v21 }
 0x1c0   : > { %v887_v48 = vmul.f32 %v3049_v39, %v863_v17  ;;  %v777_v6 = vadd.f32 %v761_v36, %v650_v23  ;;  %v958_v5 = vsel %vm949_vm3, %v4970_v14, %v4969_v63  ;;  %v956_v35 = vsel %vm949_vm3, %v4969_v63, %v3293_v44 }
 0x1c1   : > { %v1024_v43 = vmul.f32 %v3087_v11, %v1000_v4  ;;  %v960_v4 = vsel %vm949_vm3, %v4967_v28, %v4970_v14  ;;  %v773_v17 = vmul.f32 %v3021_v20, %v749_v53  ;;  %v774_v36 = vmul.f32 %v3021_v20, %v750_v41 }
 0x1c2   : > { %v977_v23 = vperm.slane %v3223_v19, 6  ;;  %v4972_v44 = vperm.slane %v3223_v19, 1  ;;  %v903_v14 = vadd.f32 %v887_v48, %v777_v6  ;;  %v4974_v20 = vperm.slane %v3223_v19, 3 }
 0x1c3   : > { %v3571_v2 = vadd.f32 %v1024_v43, %v914_v38  ;;  %1325 = vrot.lane.b32.xlu0 %v3110_v37, %s2729_s18  ;;  %1307 = vrot.lane.b32.xlu1 %v4963_v59, %s2729_s18  ;;  %v4968_v38 = vld [vmem:[#allocation20_spill] sm:$0xff]  ;;  %v978_v43 = vperm.slane %v3223_v19, 7  ;;  %v4975_v41 = vperm.slane %v3223_v19, 4 }
 0x1c4   : > { %1423 = vrot.lane.b32.xlu2 %v2995_v60, %s2731_s21  ;;  %v962_v24 = vsel %vm949_vm3, %v4968_v38, %v4967_v28  ;;  %v964_v27 = vsel %vm949_vm3, %v3324_v3, %v4968_v38  ;;  %v663_v28 = vmul.f32 %v3068_v62, %v3110_v37  ;;  %v990_v53 = vmul.f32 %v4974_v20, %v958_v5 }
 0x1c5   : > { %v3588_v46 = vpop.permute.xlu1 %1061  ;;  %v3590_v47 = vpop.permute.xlu0 %1179  ;;  %v988_v63 = vmul.f32 %v4972_v44, %v962_v24  ;;  %v991_v38 = vmul.f32 %v4975_v41, %v956_v35  ;;  %v4976_v62 = vperm.slane %v3223_v19, 0  ;;  %v1002_v48 = vmul.f32 %v978_v43, %v3524_v26 }
 0x1c6   : > { %v3592_v51 = vpop.permute.xlu2 %1187  ;;  %v3598_v1 = vsel %vm1075_vm4, %v3588_v46, %v3404_v32  ;;  %v3604_v31 = vsel %vm1201_vm5, %v3554_v9, %v3590_v47  ;;  %v789_v24 = vadd.f32 %v773_v17, %v662_v16  ;;  %v790_v6 = vadd.f32 %v774_v36, %v663_v28 }
 0x1c7   : > { %4966 = vst [vmem:[#allocation14_spill] sm:$0xff] %v3604_v31  ;;  %v4973_v31 = vperm.slane %v3223_v19, 2  ;;  %v987_v39 = vmul.f32 %v4976_v62, %v964_v27  ;;  %v1026_v36 = vmul.f32 %v3087_v11, %v1002_v48 }
 0x1c9   : > { %v989_v30 = vmul.f32 %v4973_v31, %v960_v4  ;;  %v992_v31 = vmul.f32 %v976_v50, %v3391_v49  ;;  %v1001_v4 = vmul.f32 %v977_v23, %v953_v42  ;;  %v4977_v42 = vperm.slane %v3160_v8, 6 }
 0x1cb   : > { %1429 = vrot.lane.b32.xlu0 %v2970_v45, %s2731_s21  ;;  %1321 = vrot.lane.b32.xlu1 %v4971_v21, %s2729_s18 }
 0x1cc   : > { %1435 = vrot.lane.b32.xlu2 %v3023_v22, %s2731_s21 }
 0x1cd   : > { %v818_v44 = vpop.permute.xlu1 %817  ;;  %v1005_v21 = vpop.permute.xlu0 %1004 }
 0x1ce   : > { %v942_v45 = vpop.permute.xlu2 %941  ;;  %v825_v5 = vsel %vm823_vm2, %v818_v44, %v3507_v15  ;;  %v827_v19 = vsel %vm823_vm2, %v3385_v0, %v818_v44  ;;  %v3659_v26 = vmul.f32 %v1005_v21, %v988_v63  ;;  %v1015_v35 = vmul.f32 %v1005_v21, %v991_v38 }
 0x1cf   : > { %v950_v49 = vsel %vm949_vm3, %v942_v45, %v3324_v3  ;;  %v952_v50 = vsel %vm949_vm3, %v3383_v13, %v942_v45  ;;  %v875_v27 = vmul.f32 %v4977_v42, %v827_v19  ;;  %v4978_v15 = vperm.slane %v3160_v8, 7  ;;  %v4979_v3 = vld [vmem:[#allocation41_spill] sm:$0xff]  ;;  %v4980_v13 = vld [vmem:[#allocation42_spill] sm:$0xff] }
 0x1d0   : > { %v993_v0 = vmul.f32 %v977_v23, %v952_v50  ;;  %v994_v16 = vmul.f32 %v978_v43, %v950_v49  ;;  %v1016_v28 = vmul.f32 %v1005_v21, %v992_v31  ;;  %v3675_v41 = vadd.f32 %v1015_v35, %v4979_v3  ;;  %v4981_v43 = vld [vmem:[#allocation16_spill] sm:$0xff]  ;;  %v4988_v3 = vld [vmem:[#allocation18_spill] sm:$0xff] }
 0x1d1   : > { %v876_v17 = vmul.f32 %v4978_v15, %v825_v5  ;;  %v899_v63 = vmul.f32 %v3032_v29, %v875_v27  ;;  %v1011_v38 = vmul.f32 %v1005_v21, %v987_v39  ;;  %v1025_v45 = vmul.f32 %v3087_v11, %v1001_v4  ;;  %v3691_v39 = vld [vmem:[%s4823_s2 + $0x8] sm:$0xff]  ;;  %v4984_v15 = vld [vmem:[#allocation15_spill] sm:$0xff] }
 0x1d2   : > { %v3679_v62 = vadd.f32 %v1016_v28, %v4980_v13  ;;  %v1013_v44 = vmul.f32 %v1005_v21, %v989_v30  ;;  %v1014_v5 = vmul.f32 %v1005_v21, %v990_v53  ;;  %v4983_v30 = vld [vmem:[#allocation31_spill] sm:$0xff]  ;;  %v1017_v31 = vmul.f32 %v1005_v21, %v993_v0 }
 0x1d3   : > { %v900_v20 = vmul.f32 %v3032_v29, %v876_v17  ;;  %v915_v19 = vadd.f32 %v899_v63, %v789_v24  ;;  %1443 = vrot.lane.b32.xlu0 %v3079_v7, %s2731_s21  ;;  %1431 = vrot.lane.b32.xlu1 %v4981_v43, %s2731_s21  ;;  %v4982_v29 = vld [vmem:[#allocation43_spill] sm:$0xff]  ;;  %v1018_v24 = vmul.f32 %v1005_v21, %v994_v16  ;;  %v3721_v17 = vld [vmem:[%s4823_s2] sm:$0xff]  ;;  %v2734_v63 = vmov 7  }
 0x1d4   : > { %v3686_v23 = vadd.f32 %v1011_v38, %v4982_v29  ;;  %1386 = vperm.xlu2 %2561, %v3691_v39   ;;  %v3694_v11 = vadd.f32 %v1013_v44, %v903_v14  ;;  %v3697_v53 = vadd.f32 %v1014_v5, %v4983_v30  ;;  %v3706_v42 = vadd.f32 %v1017_v31, %v3485_v12  ;;  %v4985_v12 = vld [vmem:[#allocation21_spill] sm:$0xff]  ;;  %v4989_v38 = vld [vmem:[#allocation12_spill] sm:$0xff] }
 0x1d5   : > { %v916_v48 = vadd.f32 %v900_v20, %v790_v6  ;;  %v3699_v6 = vadd.f32 %v1025_v45, %v915_v19  ;;  %v1074_v35 = vpop.permute.xlu1 %1073  ;;  %v3703_v49 = vpop.permute.xlu0 %1059  ;;  %v3709_v27 = vadd.f32 %v1018_v24, %v3487_v18  ;;  %v1093_v16 = vld [vmem:[#allocation5 + $0x3] ss:$8 sm:$0xf]  ;;  %v4990_v45 = vmov 6  }
 0x1d6   : > { %v1070_v50 = vpop.permute.xlu2 %1069  ;;  %v1094_v28 = vld [vmem:[#allocation5 + $0x3] ss:$8 sm:$0xf0] }
 0x1d7   : > { %v3701_v4 = vadd.f32 %v1026_v36, %v916_v48  ;;  %v1079_v14 = vsel %vm1075_vm4, %v3404_v32, %v1070_v50  ;;  %v1077_v21 = vsel %vm1075_vm4, %v1070_v50, %v1074_v35  ;;  %v3738_v20 = vor.u32 %v1094_v28, %v1093_v16  ;;  %v4994_v30 = vld [vmem:[#allocation36_spill] sm:$0xff]  ;;  %v4995_v31 = vld [vmem:[#allocation33_spill] sm:$0xff]  ;;  %v4997_v50 = vld [vmem:[#allocation34_spill] sm:$0xff] }
 0x1d8   : > { %v1089_v24 = vsel %vm1075_vm4, %v4995_v31, %v4994_v30 }
 0x1d9   : > { %v4887_v30 = vperm.slane %v3738_v20, 1  ;;  %v4889_v48 = vperm.slane %v3738_v20, 3 }
 0x1db   : > { %1553 = vrot.lane.b32.xlu0 %v4984_v15, %s2733_s14  ;;  %1256 = vperm.xlu1 %2560, %v3721_v17  }
 0x1dc   : > { %1319 = vrot.lane.b32.xlu2 %v4985_v12, %s2729_s18 }
 0x1dd   : > { %v3726_v18 = vpop.permute.xlu1 %1171  ;;  %v3728_v32 = vpop.permute.xlu0 %1169  ;;  %2563 = vset.pattern.permute.xlu2 %v2734_v63 }
 0x1de   : > { %4986 = vst [vmem:[#allocation25_spill] sm:$0xff] %v3728_v32  ;;  %v3730_v36 = vpop.permute.xlu2 %1177  ;;  %v3736_v0 = vsel %vm1201_vm5, %v3726_v18, %v3554_v9 }
 0x1df   : > { %4987 = vst [vmem:[#allocation20_spill] sm:$0xff] %v3736_v0 }
 0x1e3   : > { %1565 = vrot.lane.b32.xlu0 %v3095_v25, %s2733_s14  ;;  %1315 = vrot.lane.b32.xlu1 %v4988_v3, %s2729_s18 }
 0x1e4   : > { %1425 = vrot.lane.b32.xlu2 %v4989_v38, %s2731_s21  ;;  %2562 = vset.pattern.permute.xlu1 %v4990_v45 }
 0x1e5   : > { %v1184_v13 = vpop.permute.xlu1 %1183  ;;  %v3747_v9 = vpop.permute.xlu0 %1181 }
 0x1e6   : > { %v1192_v44 = vpop.permute.xlu2 %1191  ;;  %v3752_v5 = vsel %vm1201_vm5, %v1184_v13, %v3592_v51  ;;  %v3757_v25 = vsel %vm1201_vm5, %v3590_v47, %v1184_v13  ;;  %v3763_v19 = vsel %vm1201_vm5, %v3730_v36, %v3747_v9  ;;  %v4996_v47 = vld [vmem:[#allocation38_spill] sm:$0xff]  ;;  %v2735_v13 = vmov 8  }
 0x1e7   : > { %4991 = vst [vmem:[#allocation24_spill] sm:$0xff] %v3752_v5  ;;  %v3769_v29 = vsel %vm1201_vm5, %v3592_v51, %v1192_v44  ;;  %v1085_v15 = vsel %vm1075_vm4, %v4997_v50, %v4996_v47  ;;  %v1091_v51 = vsel %vm1075_vm4, %v1074_v35, %v4995_v31  ;;  %2564 = vset.pattern.permute.xlu0 %v2735_v13  ;;  %v4890_v50 = vperm.slane %v3738_v20, 0  ;;  %v4998_v31 = vld [vmem:[#allocation37_spill] sm:$0xff] }
 0x1e8   : > { %4992 = vst [vmem:[#allocation30_spill] sm:$0xff] %v3763_v19  ;;  %v1083_v28 = vsel %vm1075_vm4, %v4996_v47, %v3588_v46  ;;  %v1122_v35 = vmul.f32 %v4887_v30, %v1089_v24  ;;  %v4999_v13 = vperm.slane %v3738_v20, 2  ;;  %v1124_v63 = vmul.f32 %v4889_v48, %v1085_v15 }
 0x1e9   : > { %4993 = vst [vmem:[#allocation41_spill] sm:$0xff] %v3769_v29  ;;  %v1121_v16 = vmul.f32 %v4890_v50, %v1091_v51  ;;  %v5000_v46 = vperm.slane %v3738_v20, 4  ;;  %v5001_v19 = vperm.slane %v3738_v20, 5  ;;  %v5002_v30 = vperm.slane %v3738_v20, 6 }
 0x1ea   : > { %v1123_v45 = vmul.f32 %v4999_v13, %v4998_v31  ;;  %v5003_v31 = vperm.slane %v3738_v20, 7 }
 0x1eb   : > { %1323 = vrot.lane.b32.xlu0 %v3064_v56, %s2729_s18  ;;  %1421 = vrot.lane.b32.xlu1 %v2953_v34, %s2731_s21  ;;  %v1125_v47 = vmul.f32 %v5000_v46, %v1083_v28  ;;  %v1126_v24 = vmul.f32 %v5001_v19, %v3598_v1  ;;  %v1127_v32 = vmul.f32 %v5002_v30, %v1079_v14  ;;  %v5004_v14 = vld [vmem:[#allocation22_spill] sm:$0xff]  ;;  %s2313_s18 = scalar_lea.sflag [#allocation4], %s2873_s25 }
 0x1ec   : > { %1437 = vrot.lane.b32.xlu2 %v3041_v33, %s2731_s21  ;;  %v1128_v13 = vmul.f32 %v5003_v31, %v1077_v21  ;;  %v711_v21 = vsel %vm698_vm1, %v5004_v14, %v3062_v54  ;;  %v5005_v31 = vld [vmem:[#allocation39_spill] sm:$0xff]  ;;  %v5013_v14 = vld [vmem:[#allocation26_spill] sm:$0xff] }
 0x1ed   : > { %v1135_v15 = vpop.permute.xlu1 %1134  ;;  %v3817_v48 = vpop.permute.xlu0 %1195 }
 0x1ee   : > { %v3819_v51 = vpop.permute.xlu2 %1301  ;;  %v1145_v50 = vmul.f32 %v1135_v15, %v1121_v16  ;;  %v1146_v56 = vmul.f32 %v1135_v15, %v1122_v35  ;;  %v1147_v29 = vmul.f32 %v1135_v15, %v1123_v45  ;;  %v1148_v0 = vmul.f32 %v1135_v15, %v1124_v63  ;;  %v5006_v63 = vld [vmem:[#allocation40_spill] sm:$0xff]  ;;  %v5007_v35 = vld [vmem:[#allocation35_spill] sm:$0xff] }
 0x1ef   : > { %v1149_v28 = vmul.f32 %v1135_v15, %v1125_v47  ;;  %v3824_v1 = vsel %vm1201_vm5, %v1192_v44, %v3817_v48  ;;  %v1152_v19 = vmul.f32 %v1135_v15, %v1128_v13  ;;  %v1150_v30 = vmul.f32 %v1135_v15, %v1126_v24  ;;  %v5008_v13 = vld [vmem:[#allocation23_spill] sm:$0xff]  ;;  %v5011_v24 = vld [vmem:[#allocation17_spill] sm:$0xff] }
 0x1f0   : > { %v1151_v46 = vmul.f32 %v1135_v15, %v1127_v32  ;;  %v3831_v5 = vadd.f32 %v1147_v29, %v5005_v31  ;;  %v3837_v45 = vadd.f32 %v1148_v0, %v5006_v63  ;;  %v3840_v44 = vadd.f32 %v1145_v50, %v3550_v57  ;;  %v5015_v31 = vld [vmem:[#allocation28_spill] sm:$0xff]  ;;  %v5017_v63 = vld [vmem:[#allocation29_spill] sm:$0xff] }
 0x1f1   : > { %v3834_v16 = vadd.f32 %v1152_v19, %v3701_v4  ;;  %v3843_v47 = vadd.f32 %v1146_v56, %v5007_v35  ;;  %v836_v54 = vsel %vm823_vm2, %v5008_v13, %v3118_v40  ;;  %v3850_v32 = vadd.f32 %v1150_v30, %v3571_v2  ;;  %v5018_v35 = vld [vmem:[#allocation44_spill] sm:$0xff] }
 0x1f2   : > { %v3853_v4 = vadd.f32 %v1151_v46, %v3699_v6  ;;  %v3856_v0 = vadd.f32 %v1149_v28, %v3548_v52  ;;  %v5009_v57 = vperm.slane %v3140_v58, 1  ;;  %v5010_v56 = vperm.slane %v3160_v8, 1  ;;  %v5012_v28 = vld [vmem:[#allocation32_spill] sm:$0xff] }
 0x1f3   : > { %1451 = vrot.lane.b32.xlu0 %v3110_v37, %s2731_s21  ;;  %1433 = vrot.lane.b32.xlu1 %v4963_v59, %s2731_s21  ;;  %v649_v8 = vmul.f32 %v3066_v61, %v4989_v38  ;;  %v1082_v19 = vsel %vm1075_vm4, %v5012_v28, %v3703_v49  ;;  %v5016_v61 = vld [vmem:[#allocation13_spill] sm:$0xff]  ;;  %v1090_v13 = vsel %vm1075_vm4, %v5018_v35, %v5015_v31 }
 0x1f4   : > { %v736_v29 = vmul.f32 %v5009_v57, %v711_v21  ;;  %1549 = vrot.lane.b32.xlu2 %v2995_v60, %s2733_s14  ;;  %v862_v40 = vmul.f32 %v5010_v56, %v836_v54  ;;  %v5014_v21 = vld [vmem:[#allocation27_spill] sm:$0xff]  ;;  %v5019_v54 = vperm.slane %v3738_v20, 4  ;;  %v5020_v56 = vperm.slane %v3738_v20, 2 }
 0x1f5   : > { %v1064_v2 = vpop.permute.xlu1 %1063  ;;  %v3869_v52 = vpop.permute.xlu0 %1305  ;;  %v1086_v30 = vsel %vm1075_vm4, %v5014_v21, %v5013_v14 }
 0x1f6   : > { %v3871_v6 = vpop.permute.xlu2 %1313  ;;  %v1080_v58 = vsel %vm1075_vm4, %v3703_v49, %v1064_v2  ;;  %v3880_v50 = vsel %vm1327_vm6, %v3819_v51, %v3869_v52  ;;  %v760_v60 = vmul.f32 %v3085_v10, %v736_v29  ;;  %v886_v15 = vmul.f32 %v5011_v24, %v862_v40 }
 0x1f7   : > { %v1088_v10 = vsel %vm1075_vm4, %v5015_v31, %v5014_v21  ;;  %v1084_v49 = vsel %vm1075_vm4, %v5013_v14, %v5012_v28  ;;  %v1117_v57 = vmul.f32 %v5019_v54, %v1082_v19  ;;  %v1115_v40 = vmul.f32 %v5020_v56, %v1086_v30 }
 0x1f8   : > { %v776_v46 = vadd.f32 %v760_v60, %v649_v8  ;;  %v5021_v24 = vperm.slane %v3738_v20, 1  ;;  %v5022_v14 = vperm.slane %v3738_v20, 5  ;;  %v5026_v54 = vperm.slane %v3738_v20, 6 }
 0x1fa   : > { %v902_v29 = vadd.f32 %v886_v15, %v776_v46  ;;  %v1114_v28 = vmul.f32 %v5021_v24, %v1088_v10  ;;  %v1118_v21 = vmul.f32 %v5022_v14, %v1080_v58  ;;  %v5024_v15 = vperm.slane %v3738_v20, 3 }
 0x1fb   : > { %1555 = vrot.lane.b32.xlu0 %v5016_v61, %s2733_s14  ;;  %1447 = vrot.lane.b32.xlu1 %v5017_v63, %s2731_s21  ;;  %v5025_v46 = vperm.slane %v3738_v20, 0 }
 0x1fc   : > { %1561 = vrot.lane.b32.xlu2 %v3023_v22, %s2733_s14  ;;  %v1116_v30 = vmul.f32 %v5024_v15, %v1084_v49  ;;  %v1028_v14 = vadd.f32 %v3659_v26, %v902_v29 }
 0x1fd   : > { %v3916_v60 = vpop.permute.xlu1 %1173  ;;  %v1131_v8 = vpop.permute.xlu0 %1130  ;;  %v1113_v61 = vmul.f32 %v5025_v46, %v1090_v13 }
 0x1fe   : > { %v1068_v31 = vpop.permute.xlu2 %1067  ;;  %v3926_v19 = vsel %vm1201_vm5, %v3916_v60, %v3730_v36  ;;  %v1141_v22 = vmul.f32 %v1131_v8, %v1117_v57  ;;  %v5027_v36 = vperm.slane %v3738_v20, 7  ;;  %v1142_v57 = vmul.f32 %v1131_v8, %v1118_v21 }
 0x1ff   : > { %5023 = vst [vmem:[#allocation42_spill] sm:$0xff] %v3926_v19  ;;  %v1076_v10 = vsel %vm1075_vm4, %v1068_v31, %v5018_v35  ;;  %v1078_v58 = vsel %vm1075_vm4, %v1064_v2, %v1068_v31  ;;  %v1137_v13 = vmul.f32 %v1131_v8, %v1113_v61  ;;  %v1139_v15 = vmul.f32 %v1131_v8, %v1115_v40 }
 0x200   : > { %v1119_v56 = vmul.f32 %v5026_v54, %v1078_v58  ;;  %v1120_v24 = vmul.f32 %v5027_v36, %v1076_v10  ;;  %v3943_v49 = vadd.f32 %v1141_v22, %v3675_v41  ;;  %v1140_v46 = vmul.f32 %v1131_v8, %v1116_v30 }
 0x201   : > { %v3946_v35 = vadd.f32 %v1142_v57, %v3679_v62  ;;  %v1138_v19 = vmul.f32 %v1131_v8, %v1114_v28  ;;  %v3953_v26 = vadd.f32 %v1137_v13, %v3686_v23  ;;  %v3956_v41 = vadd.f32 %v1139_v15, %v3694_v11  ;;  %v1220_v28 = vld [vmem:[#allocation5 + $0x4] ss:$8 sm:$0xf0] }
 0x202   : > { %v1143_v2 = vmul.f32 %v1131_v8, %v1119_v56  ;;  %v1144_v31 = vmul.f32 %v1131_v8, %v1120_v24  ;;  %v3959_v20 = vadd.f32 %v1140_v46, %v3697_v53  ;;  %v5029_v21 = vmov 2   ;;  %v4057_v46 = vld [vmem:[%s4827_s6] sm:$0xff] }
 0x203   : > { %1569 = vrot.lane.b32.xlu0 %v3079_v7, %s2733_s14  ;;  %1557 = vrot.lane.b32.xlu1 %v4981_v43, %s2733_s14  ;;  %v3962_v62 = vadd.f32 %v1138_v19, %v1028_v14  ;;  %v5030_v14 = vmov 1   ;;  %5031 = vst [vmem:[#allocation43_spill] sm:$0xff] %v4057_v46 }
 0x204   : > { %1512 = vperm.xlu2 %2563, %v3691_v39   ;;  %v3965_v29 = vadd.f32 %v1143_v2, %v3706_v42  ;;  %v3968_v7 = vadd.f32 %v1144_v31, %v3709_v27 }
 0x205   : > { %v3970_v43 = vpop.permute.xlu1 %1185  ;;  %v1200_v23 = vpop.permute.xlu0 %1199 }
 0x206   : > { %v3972_v40 = vpop.permute.xlu2 %1193  ;;  %v3978_v11 = vsel %vm1201_vm5, %v3747_v9, %v3970_v43  ;;  %v1203_v53 = vsel %vm1201_vm5, %v3817_v48, %v1200_v23  ;;  %v1217_v42 = vsel %vm1201_vm5, %v1200_v23, %v3726_v18  ;;  %v1219_v18 = vld [vmem:[#allocation5 + $0x4] ss:$8 sm:$0xf] }
 0x207   : > { %v4016_v22 = vor.u32 %v1220_v28, %v1219_v18  ;;  %v5032_v23 = vld [vmem:[#allocation24_spill] sm:$0xff] }
 0x209   : > { %v4894_v58 = vperm.slane %v4016_v22, 5  ;;  %v4893_v54 = vperm.slane %v4016_v22, 7  ;;  %v4896_v56 = vperm.slane %v4016_v22, 2  ;;  %v4895_v36 = vperm.slane %v4016_v22, 6 }
 0x20a   : > { %v4899_v24 = vperm.slane %v4016_v22, 3  ;;  %v4900_v57 = vperm.slane %v4016_v22, 1 }
 0x20b   : > { %1638 = vperm.xlu0 %2564, %v3691_v39   ;;  %1382 = vperm.xlu1 %2562, %v3721_v17   ;;  %v1252_v13 = vmul.f32 %v4894_v58, %v3824_v1  ;;  %v1254_v15 = vmul.f32 %v4893_v54, %v1217_v42  ;;  %v1253_v1 = vmul.f32 %v4895_v36, %v1203_v53  ;;  %v5034_v58 = vld [vmem:[#allocation20_spill] sm:$0xff] }
 0x20c   : > { %1445 = vrot.lane.b32.xlu2 %v4985_v12, %s2731_s21 }
 0x20d   : > { %v3990_v27 = vpop.permute.xlu1 %1297  ;;  %v3992_v8 = vpop.permute.xlu0 %1303 }
 0x20e   : > { %v3994_v9 = vpop.permute.xlu2 %1299  ;;  %v4000_v48 = vsel %vm1327_vm6, %v3990_v27, %v3819_v51 }
 0x20f   : > { %v4006_v39 = vsel %vm1327_vm6, %v3994_v9, %v3992_v8 }
 0x210   : > { %5028 = vst [vmem:[#allocation16_spill] sm:$0xff] %v4006_v39 }
 0x213   : > { %1634 = vperm.xlu0 %2564, %v3721_v17   ;;  %1441 = vrot.lane.b32.xlu1 %v4988_v3, %s2731_s21 }
 0x214   : > { %1551 = vrot.lane.b32.xlu2 %v4989_v38, %s2733_s14  ;;  %2568 = vset.pattern.permute.xlu1 %v5029_v21 }
 0x215   : > { %v1310_v51 = vpop.permute.xlu1 %1309  ;;  %v4014_v19 = vpop.permute.xlu0 %1317 }
 0x216   : > { %v4018_v30 = vpop.permute.xlu2 %1311  ;;  %v4023_v61 = vsel %vm1327_vm6, %v1310_v51, %v3871_v6  ;;  %v4028_v10 = vsel %vm1327_vm6, %v3869_v52, %v1310_v51  ;;  %v4034_v38 = vsel %vm1327_vm6, %v3871_v6, %v4014_v19  ;;  %v4901_v52 = vperm.slane %v4016_v22, 0  ;;  %v5033_v51 = vld [vmem:[#allocation14_spill] sm:$0xff] }
 0x217   : > { %v1227_v6 = vperm.slane %v4016_v22, 4  ;;  %v1248_v54 = vmul.f32 %v4900_v57, %v5033_v51 }
 0x21b   : > { %2566 = vset.pattern.permute.xlu0 %v5030_v14  ;;  %1547 = vrot.lane.b32.xlu1 %v2953_v34, %s2733_s14  ;;  %v1249_v34 = vmul.f32 %v4896_v56, %v3757_v25  ;;  %v1247_v25 = vmul.f32 %v4901_v52, %v5034_v58  ;;  %v5035_v56 = vld [vmem:[#allocation41_spill] sm:$0xff] }
 0x21c   : > { %1563 = vrot.lane.b32.xlu2 %v3041_v33, %s2733_s14  ;;  %1674 = vperm.xlu0 %2566, %v4057_v46   ;;  %v1250_v33 = vmul.f32 %v4899_v24, %v5032_v23  ;;  %v1251_v46 = vmul.f32 %v1227_v6, %v5035_v56  ;;  %v5036_v56 = vmov 4  }
 0x21d   : > { %v1261_v2 = vpop.permute.xlu1 %1260  ;;  %v4065_v31 = vpop.permute.xlu0 %1427 }
 0x21e   : > { %v4070_v42 = vpop.permute.xlu2 %1423  ;;  %v1278_v18 = vmul.f32 %v1261_v2, %v1254_v15  ;;  %v1276_v28 = vmul.f32 %v1261_v2, %v1252_v13  ;;  %v1277_v53 = vmul.f32 %v1261_v2, %v1253_v1  ;;  %v1273_v36 = vmul.f32 %v1261_v2, %v1249_v34  ;;  %v1345_v1 = vld [vmem:[#allocation5 + $0x5] ss:$8 sm:$0xf] }
 0x21f   : > { %v1274_v13 = vmul.f32 %v1261_v2, %v1250_v33  ;;  %v1271_v57 = vmul.f32 %v1261_v2, %v1247_v25  ;;  %v1272_v58 = vmul.f32 %v1261_v2, %v1248_v54  ;;  %v1346_v34 = vld [vmem:[#allocation5 + $0x5] ss:$8 sm:$0xf0]  ;;  %v1275_v39 = vmul.f32 %v1261_v2, %v1251_v46 }
 0x220   : > { %v4082_v23 = vadd.f32 %v1278_v18, %v3834_v16  ;;  %v4085_v15 = vadd.f32 %v1276_v28, %v3850_v32  ;;  %v4088_v24 = vadd.f32 %v1277_v53, %v3853_v4  ;;  %v1289_v51 = vadd.f32 %v1273_v36, %v3831_v5 }
 0x221   : > { %v1290_v52 = vadd.f32 %v1274_v13, %v3837_v45  ;;  %v1287_v16 = vadd.f32 %v1271_v57, %v3840_v44  ;;  %v1288_v32 = vadd.f32 %v1272_v58, %v3843_v47  ;;  %v1291_v4 = vadd.f32 %v1275_v39, %v3856_v0 }
 0x222   : > { %v4099_v5 = vor.u32 %v1346_v34, %v1345_v1 }
 0x223   : > { %1559 = vrot.lane.b32.xlu1 %v4963_v59, %s2733_s14 }
 0x224   : > { %1508 = vperm.xlu2 %2563, %v3721_v17   ;;  %2567 = vset.pattern.permute.xlu0 %v5036_v56  ;;  %v1350_v47 = vperm.slane %v4099_v5, 1  ;;  %v1349_v0 = vperm.slane %v4099_v5, 0  ;;  %v1351_v39 = vperm.slane %v4099_v5, 2  ;;  %v4906_v57 = vperm.slane %v4099_v5, 3  ;;  %v5037_v56 = vld [vmem:[#allocation19_spill] sm:$0xff] }
 0x225   : > { %v1190_v54 = vpop.permute.xlu1 %1189  ;;  %v4101_v36 = vpop.permute.xlu0 %1439  ;;  %v4905_v46 = vperm.slane %v4099_v5, 4 }
 0x226   : > { %v4104_v45 = vpop.permute.xlu2 %1435  ;;  %v4109_v59 = vsel %vm1201_vm5, %v1190_v54, %v3972_v40  ;;  %v4114_v17 = vsel %vm1201_vm5, %v3970_v43, %v1190_v54  ;;  %v1374_v43 = vmul.f32 %v1350_v47, %v3880_v50  ;;  %v1373_v2 = vmul.f32 %v1349_v0, %v4000_v48 }
 0x227   : > { %v4120_v44 = vsel %vm1453_vm7, %v4104_v45, %v4101_v36 }
 0x22b   : > { %1573 = vrot.lane.b32.xlu1 %v5017_v63, %s2733_s14  ;;  %v1375_v63 = vmul.f32 %v1351_v39, %v4028_v10 }
 0x22c   : > { %1567 = vrot.lane.b32.xlu2 %v4988_v3, %s2733_s14  ;;  %v1376_v3 = vmul.f32 %v4906_v57, %v4023_v61 }
 0x22d   : > { %v4137_v33 = vpop.permute.xlu1 %1295  ;;  %v1198_v18 = vpop.permute.xlu0 %1197  ;;  %2565 = vset.pattern.permute.xlu2 %v5030_v14  ;;  %v1377_v14 = vmul.f32 %v4905_v46, %v4034_v38 }
 0x22e   : > { %v1387_v28 = vpop.permute.xlu2 %1386  ;;  %v4150_v50 = vsel %vm1327_vm6, %v4137_v33, %v3994_v9  ;;  %v1202_v48 = vsel %vm1201_vm5, %v3972_v40, %v1198_v18  ;;  %v4902_v40 = vperm.slane %v4099_v5, 7 }
 0x22f   : > { %v1399_v10 = vmul.f32 %v1387_v28, %v1375_v63  ;;  %v1400_v25 = vmul.f32 %v1387_v28, %v1376_v3  ;;  %v1397_v53 = vmul.f32 %v1387_v28, %v1373_v2  ;;  %v1398_v13 = vmul.f32 %v1387_v28, %v1374_v43 }
 0x230   : > { %v1401_v61 = vmul.f32 %v1387_v28, %v1377_v14  ;;  %v4904_v63 = vperm.slane %v4099_v5, 5  ;;  %v4903_v3 = vperm.slane %v4099_v5, 6 }
 0x231   : > { %v4158_v58 = vadd.f32 %v1399_v10, %v1289_v51  ;;  %v4160_v1 = vadd.f32 %v1400_v25, %v1290_v52  ;;  %v4162_v34 = vadd.f32 %v1397_v53, %v1287_v16  ;;  %v4164_v9 = vadd.f32 %v1398_v13, %v1288_v32 }
 0x232   : > { %v4169_v54 = vadd.f32 %v1401_v61, %v1291_v4 }
 0x233   : > { %1449 = vrot.lane.b32.xlu1 %v5037_v56, %s2731_s21  ;;  %s2658_s21 = sshra.s32 %s2329_s12, 4  ;;  %s2659_s21 = int_to_ptr.hbm [resolvable:$true] %s2658_s21 }
 0x234   : > { %1577 = vrot.lane.b32.xlu2 %v3110_v37, %s2733_s14  ;;  %s2660_s11 = scalar_lea.hbm %s2659_s21, 64  ;;  %p2665_p12 = scmp.lt.s32.totalorder %s2659_s21, %s4829_s8 }
 0x235   : > { %v1308_v38 = vpop.permute.xlu1 %1307  ;;  %v1326_v43 = vpop.permute.xlu0 %1325  ;;  %p2661_p1 = scmp.ne.s32.totalorder %s2659_s21, %s2660_s11  ;;  %p2666_p8 = scmp.lt.s32.totalorder %s2664_s15, %s2660_s11 }
 0x236   : > { %v4173_v51 = vpop.permute.xlu2 %1319  ;;  %v4178_v52 = vsel %vm1327_vm6, %v1308_v38, %v4018_v30  ;;  %v4183_v16 = vsel %vm1327_vm6, %v3992_v8, %v1308_v38  ;;  %v1343_v32 = vsel %vm1327_vm6, %v1326_v43, %v3990_v27  ;;  %v4200_v8 = vld [vmem:[%s4827_s6 + $0x8] sm:$0xff] }
 0x237   : > { %v1380_v37 = vmul.f32 %v4902_v40, %v1343_v32  ;;  %p2662_p3 = pnand %p2661_p1, %p2842_p13  ;;  %p2667_p7 = por %p2666_p8, %p2665_p12 }
 0x239   : > { %v1404_v4 = vmul.f32 %v1387_v28, %v1380_v37  ;;  %p2663_p5 = pneg %p2662_p3 }
 0x23b   : > { %v4191_v2 = vadd.f32 %v1404_v4, %v4082_v23  ;;  %1571 = vrot.lane.b32.xlu1 %v4985_v12, %s2733_s14  ;;  %p2668_p9 = pnand %p2667_p7, %p2663_p5 }
 0x23c   : > { %1678 = vperm.xlu2 %2565, %v4200_v8  }
 0x23d   : > { %v1322_v27 = vpop.permute.xlu1 %1321  ;;  %v4203_v14 = vpop.permute.xlu0 %1429 }
 0x23e   : > { %v4205_v10 = vpop.permute.xlu2 %1425  ;;  %v1329_v23 = vsel %vm1327_vm6, %v1322_v27, %v1326_v43  ;;  %v1331_v12 = vsel %vm1327_vm6, %v4014_v19, %v1322_v27  ;;  %v1243_v27 = vmul.f32 %v1227_v6, %v4114_v17  ;;  %v5043_v6 = vperm.slane %v4016_v22, 3 }
 0x23f   : > { %v1378_v25 = vmul.f32 %v4904_v63, %v1331_v12  ;;  %v1379_v53 = vmul.f32 %v4903_v3, %v1329_v23  ;;  %v4220_v13 = vsel %vm1453_vm7, %v4205_v10, %v4203_v14  ;;  %v5040_v12 = vld [vmem:[#allocation30_spill] sm:$0xff] }
 0x240   : > { %v1242_v17 = vmul.f32 %v5043_v6, %v3978_v11  ;;  %v5044_v3 = vld [vmem:[#allocation42_spill] sm:$0xff] }
 0x241   : > { %v1402_v61 = vmul.f32 %v1387_v28, %v1378_v25  ;;  %v1403_v38 = vmul.f32 %v1387_v28, %v1379_v53  ;;  %v5041_v25 = vperm.slane %v4016_v22, 2 }
 0x243   : > { %v4223_v43 = vadd.f32 %v1402_v61, %v4085_v15  ;;  %v4226_v32 = vadd.f32 %v1403_v38, %v4088_v24  ;;  %1575 = vrot.lane.b32.xlu1 %v5037_v56, %s2733_s14  ;;  %v1241_v53 = vmul.f32 %v5041_v25, %v5040_v12  ;;  %v5042_v61 = vperm.slane %v4016_v22, 0 }
 0x244   : > { %2569 = vset.pattern.permute.xlu2 %v5029_v21  ;;  %v5038_v21 = vld [vmem:[#allocation25_spill] sm:$0xff]  ;;  %v5045_v12 = vperm.slane %v4016_v22, 1 }
 0x245   : > { %v1432_v19 = vpop.permute.xlu1 %1431  ;;  %v4231_v37 = vpop.permute.xlu0 %1443  ;;  %v1214_v56 = vsel %vm1201_vm5, %v5038_v21, %v3916_v60  ;;  %v1216_v38 = vsel %vm1201_vm5, %v1198_v18, %v5038_v21  ;;  %v5047_v21 = vperm.slane %v4016_v22, 7 }
 0x246   : > { %v4233_v4 = vpop.permute.xlu2 %1437  ;;  %v1463_v28 = vsel %vm1453_vm7, %v1432_v19, %v4104_v45  ;;  %v1465_v15 = vsel %vm1453_vm7, %v4065_v31, %v1432_v19  ;;  %v1459_v24 = vsel %vm1453_vm7, %v4101_v36, %v4231_v37  ;;  %v5039_v45 = vperm.slane %v4016_v22, 5 }
 0x247   : > { %v1239_v36 = vmul.f32 %v5042_v61, %v1214_v56  ;;  %v1240_v25 = vmul.f32 %v5045_v12, %v5044_v3  ;;  %v5046_v56 = vperm.slane %v4016_v22, 6  ;;  %v1246_v46 = vmul.f32 %v5047_v21, %v1216_v38 }
 0x248   : > { %v1244_v23 = vmul.f32 %v5039_v45, %v4109_v59 }
 0x249   : > { %v1245_v61 = vmul.f32 %v5046_v56, %v1202_v48 }
 0x24d   : > { %v1257_v60 = vpop.permute.xlu1 %1256  ;;  %v4263_v19 = vpop.permute.xlu0 %1553 }
 0x24e   : > { %v4268_v40 = vpop.permute.xlu2 %1549  ;;  %v1267_v59 = vmul.f32 %v1257_v60, %v1243_v27  ;;  %v1268_v45 = vmul.f32 %v1257_v60, %v1244_v23  ;;  %v1263_v63 = vmul.f32 %v1257_v60, %v1239_v36  ;;  %v1265_v18 = vmul.f32 %v1257_v60, %v1241_v53  ;;  %v1471_v36 = vld [vmem:[#allocation5 + $0x6] ss:$8 sm:$0xf] }
 0x24f   : > { %v1266_v27 = vmul.f32 %v1257_v60, %v1242_v17  ;;  %v1264_v6 = vmul.f32 %v1257_v60, %v1240_v25  ;;  %v1269_v48 = vmul.f32 %v1257_v60, %v1245_v61  ;;  %v1472_v53 = vld [vmem:[#allocation5 + $0x6] ss:$8 sm:$0xf0]  ;;  %v1270_v38 = vmul.f32 %v1257_v60, %v1246_v46 }
 0x250   : > { %v4278_v57 = vadd.f32 %v1267_v59, %v3943_v49  ;;  %v4281_v11 = vadd.f32 %v1268_v45, %v3946_v35  ;;  %v4284_v23 = vadd.f32 %v1263_v63, %v3953_v26  ;;  %v4287_v3 = vadd.f32 %v1265_v18, %v3956_v41 }
 0x251   : > { %v4290_v22 = vadd.f32 %v1266_v27, %v3959_v20  ;;  %v4293_v49 = vadd.f32 %v1264_v6, %v3962_v62  ;;  %v4296_v35 = vadd.f32 %v1269_v48, %v3965_v29  ;;  %v4299_v26 = vadd.f32 %v1270_v38, %v3968_v7 }
 0x252   : > { %v4301_v63 = vor.u32 %v1472_v53, %v1471_v36  ;;  %v1467_v60 = vsel %vm1453_vm7, %v4070_v42, %v4065_v31 }
 0x254   : > { %v1475_v29 = vperm.slane %v4301_v63, 0  ;;  %v1478_v7 = vperm.slane %v4301_v63, 3  ;;  %v1477_v46 = vperm.slane %v4301_v63, 2  ;;  %v4908_v45 = vperm.slane %v4301_v63, 4 }
 0x255   : > { %v1316_v41 = vpop.permute.xlu1 %1315  ;;  %v4303_v17 = vpop.permute.xlu0 %1565  ;;  %v1476_v12 = vperm.slane %v4301_v63, 1 }
 0x256   : > { %v4305_v59 = vpop.permute.xlu2 %1561  ;;  %v4310_v20 = vsel %vm1327_vm6, %v1316_v41, %v4173_v51  ;;  %v4315_v62 = vsel %vm1327_vm6, %v4018_v30, %v1316_v41  ;;  %v1499_v25 = vmul.f32 %v1475_v29, %v1467_v60  ;;  %v1502_v30 = vmul.f32 %v1478_v7, %v4120_v44 }
 0x257   : > { %v1501_v56 = vmul.f32 %v1477_v46, %v1463_v28  ;;  %v1500_v21 = vmul.f32 %v1476_v12, %v1465_v15  ;;  %v1503_v31 = vmul.f32 %v4908_v45, %v1459_v24  ;;  %v4907_v60 = vperm.slane %v4301_v63, 7 }
 0x25d   : > { %v4333_v61 = vpop.permute.xlu1 %1421  ;;  %v1324_v18 = vpop.permute.xlu0 %1323 }
 0x25e   : > { %v1513_v27 = vpop.permute.xlu2 %1512  ;;  %v4340_v6 = vsel %vm1327_vm6, %v4173_v51, %v1324_v18  ;;  %v4345_v44 = vsel %vm1327_vm6, %v1324_v18, %v4137_v33  ;;  %v4909_v18 = vperm.slane %v4301_v63, 6 }
 0x25f   : > { %v1525_v48 = vmul.f32 %v1513_v27, %v1501_v56  ;;  %v1526_v28 = vmul.f32 %v1513_v27, %v1502_v30  ;;  %v1523_v36 = vmul.f32 %v1513_v27, %v1499_v25  ;;  %v1524_v53 = vmul.f32 %v1513_v27, %v1500_v21 }
 0x260   : > { %v1527_v38 = vmul.f32 %v1513_v27, %v1503_v31 }
 0x261   : > { %v4348_v15 = vadd.f32 %v1525_v48, %v4158_v58  ;;  %v4351_v24 = vadd.f32 %v1526_v28, %v4160_v1  ;;  %v4354_v41 = vadd.f32 %v1523_v36, %v4162_v34  ;;  %v4357_v51 = vadd.f32 %v1524_v53, %v4164_v9  ;;  %v1597_v53 = vld [vmem:[#allocation5 + $0x7] ss:$8 sm:$0xf] }
 0x262   : > { %v4360_v33 = vadd.f32 %v1527_v38, %v4169_v54  ;;  %v1480_v54 = vperm.slane %v4301_v63, 5  ;;  %v1598_v38 = vld [vmem:[#allocation5 + $0x7] ss:$8 sm:$0xf0] }
 0x265   : > { %v1434_v25 = vpop.permute.xlu1 %1433  ;;  %v1452_v30 = vpop.permute.xlu0 %1451 }
 0x266   : > { %v4363_v56 = vpop.permute.xlu2 %1445  ;;  %v1469_v58 = vsel %vm1453_vm7, %v1452_v30, %v4070_v42 }
 0x267   : > { %v1506_v1 = vmul.f32 %v4907_v60, %v1469_v58 }
 0x269   : > { %v1530_v34 = vmul.f32 %v1513_v27, %v1506_v1 }
 0x26b   : > { %v4371_v9 = vadd.f32 %v1530_v34, %v4191_v2 }
 0x26d   : > { %v1448_v21 = vpop.permute.xlu1 %1447  ;;  %v4375_v31 = vpop.permute.xlu0 %1555 }
 0x26e   : > { %v4377_v48 = vpop.permute.xlu2 %1551  ;;  %v1455_v28 = vsel %vm1453_vm7, %v1448_v21, %v1452_v30  ;;  %v1457_v42 = vsel %vm1453_vm7, %v4231_v37, %v1448_v21  ;;  %v4394_v30 = vor.u32 %v1598_v38, %v1597_v53  ;;  %v1365_v53 = vmul.f32 %v1349_v0, %v4150_v50 }
 0x26f   : > { %v1504_v2 = vmul.f32 %v1480_v54, %v1457_v42  ;;  %v1505_v36 = vmul.f32 %v4909_v18, %v1455_v28  ;;  %v1466_v42 = vsel %vm1453_vm7, %v4333_v61, %v4205_v10  ;;  %v5049_v38 = vperm.slane %v4099_v5, 3 }
 0x270   : > { %v4910_v28 = vperm.slane %v4394_v30, 0  ;;  %v5051_v0 = vperm.slane %v4099_v5, 5 }
 0x271   : > { %v1528_v58 = vmul.f32 %v1513_v27, %v1504_v2  ;;  %v1529_v1 = vmul.f32 %v1513_v27, %v1505_v36  ;;  %v5048_v27 = vld [vmem:[#allocation16_spill] sm:$0xff]  ;;  %v1460_v2 = vsel %vm1453_vm7, %v1434_v25, %v4233_v4  ;;  %v1462_v36 = vsel %vm1453_vm7, %v4203_v14, %v1434_v25 }
 0x272   : > { %v1368_v10 = vmul.f32 %v5049_v38, %v4178_v52  ;;  %v5050_v14 = vperm.slane %v4099_v5, 4  ;;  %v1370_v50 = vmul.f32 %v5051_v0, %v4310_v20  ;;  %v1493_v52 = vmul.f32 %v1477_v46, %v1462_v36 }
 0x273   : > { %v4389_v34 = vadd.f32 %v1528_v58, %v4223_v43  ;;  %v4392_v60 = vadd.f32 %v1529_v1, %v4226_v32  ;;  %v1593_v43 = vsel %vm1579_vm8, %v4268_v40, %v4263_v19  ;;  %v1366_v32 = vmul.f32 %v1350_v47, %v5048_v27 }
 0x274   : > { %v1367_v47 = vmul.f32 %v1351_v39, %v4183_v16  ;;  %v1492_v58 = vmul.f32 %v1476_v12, %v4220_v13  ;;  %v1625_v1 = vmul.f32 %v4910_v28, %v1593_v43  ;;  %v1369_v25 = vmul.f32 %v5050_v14, %v4315_v62 }
 0x275   : > { %v4396_v45 = vpop.permute.xlu1 %1557  ;;  %v4398_v37 = vpop.permute.xlu0 %1569  ;;  %v1602_v27 = vperm.slane %v4394_v30, 1  ;;  %v1491_v39 = vmul.f32 %v1475_v29, %v1466_v42  ;;  %v1494_v16 = vmul.f32 %v1478_v7, %v1460_v2  ;;  %v1605_v13 = vperm.slane %v4394_v30, 4 }
 0x276   : > { %v4401_v21 = vpop.permute.xlu2 %1563  ;;  %v1585_v29 = vsel %vm1579_vm8, %v4303_v17, %v4398_v37 }
 0x27d   : > { %v1383_v12 = vpop.permute.xlu1 %1382  ;;  %v4447_v43 = vpop.permute.xlu0 %1638 }
 0x27e   : > { %v4449_v62 = vpop.permute.xlu2 %1508  ;;  %v1393_v38 = vmul.f32 %v1383_v12, %v1369_v25  ;;  %v1394_v20 = vmul.f32 %v1383_v12, %v1370_v50  ;;  %v1389_v14 = vmul.f32 %v1383_v12, %v1365_v53  ;;  %v1392_v0 = vmul.f32 %v1383_v12, %v1368_v10 }
 0x27f   : > { %v1515_v46 = vmul.f32 %v4449_v62, %v1491_v39  ;;  %v1518_v7 = vmul.f32 %v4449_v62, %v1494_v16  ;;  %v1391_v42 = vmul.f32 %v1383_v12, %v1367_v47  ;;  %v5052_v53 = vperm.slane %v4099_v5, 6 }
 0x280   : > { %v1409_v2 = vadd.f32 %v1393_v38, %v4278_v57  ;;  %v1410_v36 = vadd.f32 %v1394_v20, %v4281_v11  ;;  %v1405_v18 = vadd.f32 %v1389_v14, %v4284_v23  ;;  %v1408_v25 = vadd.f32 %v1392_v0, %v4290_v22 }
 0x281   : > { %v1371_v10 = vmul.f32 %v5052_v53, %v4340_v6  ;;  %v1407_v50 = vadd.f32 %v1391_v42, %v4287_v3  ;;  %v1517_v28 = vmul.f32 %v4449_v62, %v1493_v52  ;;  %v1390_v39 = vmul.f32 %v1383_v12, %v1366_v32 }
 0x282   : > { %v5053_v47 = vperm.slane %v4099_v5, 7  ;;  %v1531_v57 = vadd.f32 %v1515_v46, %v1405_v18  ;;  %v4469_v38 = vadd.f32 %v1518_v7, %v1408_v25  ;;  %v1649_v11 = vmul.f32 %v4447_v43, %v1625_v1 }
 0x283   : > { %v1629_v23 = vmul.f32 %v1605_v13, %v1585_v29  ;;  %v4474_v22 = vadd.f32 %v1517_v28, %v1407_v50  ;;  %v1406_v6 = vadd.f32 %v1390_v39, %v4293_v49  ;;  %v1516_v3 = vmul.f32 %v4449_v62, %v1492_v58 }
 0x284   : > { %v1372_v16 = vmul.f32 %v5053_v47, %v4345_v44  ;;  %v1590_v5 = vsel %vm1579_vm8, %v4377_v48, %v4375_v31  ;;  %v4483_v44 = vadd.f32 %v1649_v11, %v4354_v41  ;;  %v1395_v18 = vmul.f32 %v1383_v12, %v1371_v10 }
 0x285   : > { %v1442_v1 = vpop.permute.xlu1 %1441  ;;  %v4485_v52 = vpop.permute.xlu0 %1634  ;;  %v1532_v20 = vadd.f32 %v1516_v3, %v1406_v6  ;;  %v1653_v28 = vmul.f32 %v4447_v43, %v1629_v23  ;;  %v5054_v0 = vperm.slane %v4301_v63, 4  ;;  %v1604_v53 = vperm.slane %v4394_v30, 3 }
 0x286   : > { %v1396_v32 = vmul.f32 %v1383_v12, %v1372_v16  ;;  %v4488_v14 = vpop.permute.xlu2 %1567  ;;  %v1456_v49 = vsel %vm1453_vm7, %v1442_v1, %v4363_v56  ;;  %v1458_v58 = vsel %vm1453_vm7, %v4233_v4, %v1442_v1  ;;  %v4497_v41 = vadd.f32 %v1395_v18, %v4296_v35 }
 0x287   : > { %v1618_v12 = vmul.f32 %v1602_v27, %v1590_v5  ;;  %v1495_v29 = vmul.f32 %v5054_v0, %v1458_v58  ;;  %v1496_v46 = vmul.f32 %v1480_v54, %v1456_v49  ;;  %v4509_v42 = vadd.f32 %v1653_v28, %v4360_v33 }
 0x288   : > { %v4506_v7 = vadd.f32 %v1396_v32, %v4299_v26  ;;  %v1603_v10 = vperm.slane %v4394_v30, 2  ;;  %v1587_v54 = vsel %vm1579_vm8, %v4305_v59, %v4303_v17  ;;  %v1589_v26 = vsel %vm1579_vm8, %v4396_v45, %v4305_v59 }
 0x289   : > { %v1519_v4 = vmul.f32 %v4449_v62, %v1495_v29  ;;  %v1520_v35 = vmul.f32 %v4449_v62, %v1496_v46  ;;  %v1642_v25 = vmul.f32 %v4485_v52, %v1618_v12  ;;  %v1608_v39 = vperm.slane %v4394_v30, 7 }
 0x28a   : > { %v1591_v47 = vsel %vm1579_vm8, %v4263_v19, %v4396_v45  ;;  %v1628_v17 = vmul.f32 %v1604_v53, %v1587_v54  ;;  %v1627_v23 = vmul.f32 %v1603_v10, %v1589_v26  ;;  %v5055_v45 = vperm.slane %v4394_v30, 0 }
 0x28b   : > { %v4524_v33 = vadd.f32 %v1519_v4, %v1409_v2  ;;  %v4526_v50 = vadd.f32 %v1520_v35, %v1410_v36  ;;  %v1658_v11 = vadd.f32 %v1642_v25, %v1532_v20  ;;  %v1584_v36 = vsel %vm1579_vm8, %v4401_v21, %v4488_v14 }
 0x28c   : > { %v1626_v18 = vmul.f32 %v1602_v27, %v1591_v47  ;;  %v1651_v20 = vmul.f32 %v4447_v43, %v1627_v23  ;;  %v1652_v28 = vmul.f32 %v4447_v43, %v1628_v17  ;;  %v1606_v29 = vperm.slane %v4394_v30, 5 }
 0x28d   : > { %v4533_v16 = vpop.permute.xlu1 %1547  ;;  %v1607_v46 = vperm.slane %v4394_v30, 6 }
 0x28e   : > { %v1578_v6 = vpop.permute.xlu2 %1577  ;;  %v1592_v59 = vsel %vm1579_vm8, %v4533_v16, %v4377_v48  ;;  %v4539_v2 = vpop.permute.xlu0 %1674  ;;  %v1650_v58 = vmul.f32 %v4447_v43, %v1626_v18  ;;  %v1667_v54 = vadd.f32 %v1651_v20, %v4348_v15 }
 0x28f   : > { %v1595_v19 = vsel %vm1579_vm8, %v1578_v6, %v4268_v40  ;;  %v1617_v3 = vmul.f32 %v5055_v45, %v1592_v59  ;;  %v1682_v5 = vadd.f32 %v4539_v2, %v1658_v11  ;;  %v1621_v40 = vmul.f32 %v1605_v13, %v1584_v36 }
 0x290   : > { %v1632_v48 = vmul.f32 %v1608_v39, %v1595_v19  ;;  %v1668_v13 = vadd.f32 %v1652_v28, %v4351_v24  ;;  %v1666_v47 = vadd.f32 %v1650_v58, %v4357_v51 }
 0x291   : > { %v1641_v32 = vmul.f32 %v4485_v52, %v1617_v3  ;;  %v1698_v1 = vadd.f32 3.0, %v1682_v5  ;;  %v4580_v11 = vmul.f32 %v4485_v52, %v1621_v40 }
 0x292   : > { %v1656_v49 = vmul.f32 %v4447_v43, %v1632_v48 }
 0x293   : > { %v1657_v12 = vadd.f32 %v1641_v32, %v1531_v57  ;;  %v1714_v0 = vmax.f32 %v1698_v1, 0.0 }
 0x294   : > { %v4563_v27 = vadd.f32 %v1656_v49, %v4371_v9 }
 0x295   : > { %v1560_v4 = vpop.permute.xlu1 %1559  ;;  %v1681_v35 = vadd.f32 %v4539_v2, %v1657_v12  ;;  %v1730_v25 = vmin.f32 %v1714_v0, 6.0 }
 0x296   : > { %v4570_v26 = vpop.permute.xlu2 %1678  ;;  %v1586_v57 = vsel %vm1579_vm8, %v1560_v4, %v4401_v21  ;;  %v1588_v9 = vsel %vm1579_vm8, %v4375_v31, %v1560_v4 }
 0x297   : > { %v1619_v17 = vmul.f32 %v1603_v10, %v1588_v9  ;;  %v1620_v23 = vmul.f32 %v1604_v53, %v1586_v57  ;;  %v1697_v15 = vadd.f32 3.0, %v1681_v35  ;;  %v1746_v59 = vmul.f32 %v1730_v25, %v1682_v5 }
 0x298   : > { %v1691_v24 = vadd.f32 %v4570_v26, %v1667_v54  ;;  %v1692_v36 = vadd.f32 %v4570_v26, %v1668_v13  ;;  %v1689_v21 = vadd.f32 %v4570_v26, %v4483_v44  ;;  %v1690_v19 = vadd.f32 %v4570_v26, %v1666_v47 }
 0x299   : > { %v1643_v31 = vmul.f32 %v4485_v52, %v1619_v17  ;;  %v1644_v51 = vmul.f32 %v4485_v52, %v1620_v23  ;;  %v1713_v45 = vmax.f32 %v1697_v15, 0.0  ;;  %v4589_v3 = vmul.f32 0.16666667, %v1746_v59 }
 0x29a   : > { %v1707_v10 = vadd.f32 3.0, %v1691_v24  ;;  %v1708_v53 = vadd.f32 3.0, %v1692_v36  ;;  %v1705_v18 = vadd.f32 3.0, %v1689_v21  ;;  %v1706_v5 = vadd.f32 3.0, %v1690_v19 }
 0x29b   : > { %v1659_v48 = vadd.f32 %v1643_v31, %v4474_v22  ;;  %v1660_v32 = vadd.f32 %v1644_v51, %v4469_v38  ;;  %v1729_v1 = vmin.f32 %v1713_v45, 6.0  ;;  %v4595_v44 = vadd.f32 %v4570_v26, %v4509_v42 }
 0x29c   : > { %v1723_v20 = vmax.f32 %v1707_v10, 0.0  ;;  %v1724_v28 = vmax.f32 %v1708_v53, 0.0  ;;  %v1721_v40 = vmax.f32 %v1705_v18, 0.0  ;;  %v1722_v49 = vmax.f32 %v1706_v5, 0.0 }
 0x29d   : > { %v1574_v58 = vpop.permute.xlu1 %1573  ;;  %v1745_v12 = vmul.f32 %v1729_v1, %v1681_v35  ;;  %v1683_v0 = vadd.f32 %v4539_v2, %v1659_v48  ;;  %v1684_v4 = vadd.f32 %v4539_v2, %v1660_v32  ;;  %v1709_v25 = vadd.f32 3.0, %v4595_v44 }
 0x29e   : > { %v1581_v38 = vsel %vm1579_vm8, %v1574_v58, %v1578_v6  ;;  %v1583_v22 = vsel %vm1579_vm8, %v4398_v37, %v1574_v58  ;;  %v1739_v42 = vmin.f32 %v1723_v20, 6.0  ;;  %v1740_v54 = vmin.f32 %v1724_v28, 6.0 }
 0x29f   : > { %v1630_v13 = vmul.f32 %v1606_v29, %v1583_v22  ;;  %v1631_v35 = vmul.f32 %v1607_v46, %v1581_v38  ;;  %v4609_v57 = vmul.f32 0.16666667, %v1745_v12  ;;  %v1737_v9 = vmin.f32 %v1721_v40, 6.0 }
 0x2a0   : > { %v1755_v47 = vmul.f32 %v1739_v42, %v1691_v24  ;;  %v1756_v17 = vmul.f32 %v1740_v54, %v1692_v36  ;;  %v1738_v23 = vmin.f32 %v1722_v49, 6.0  ;;  %v1699_v15 = vadd.f32 3.0, %v1683_v0 }
 0x2a1   : > { %v1654_v6 = vmul.f32 %v4447_v43, %v1630_v13  ;;  %v1655_v59 = vmul.f32 %v4447_v43, %v1631_v35  ;;  %v1777_v37 = vadd.f32 %v4589_v3, %v4609_v57  ;;  %v1753_v31 = vmul.f32 %v1737_v9, %v1689_v21 }
 0x2a2   : > { %v4615_v51 = vmul.f32 0.16666667, %v1755_v47  ;;  %v4617_v45 = vmul.f32 0.16666667, %v1756_v17  ;;  %v1754_v10 = vmul.f32 %v1738_v23, %v1690_v19  ;;  %v1700_v53 = vadd.f32 3.0, %v1684_v4 }
 0x2a3   : > { %v1670_v18 = vadd.f32 %v1654_v6, %v4389_v34  ;;  %v1671_v24 = vadd.f32 %v1655_v59, %v4392_v60  ;;  %1778 = vadd.xlane.f32.xlu0 %v1777_v37  ;;  %v4621_v36 = vmul.f32 0.16666667, %v1753_v31  ;;  %v1715_v5 = vmax.f32 %v1699_v15, 0.0 }
 0x2a4   : > { %v1795_v43 = vadd.f32 %v4617_v45, %v4615_v51  ;;  %v4625_v48 = vmul.f32 0.16666667, %v1754_v10  ;;  %v1716_v21 = vmax.f32 %v1700_v53, 0.0  ;;  %v1725_v32 = vmax.f32 %v1709_v25, 0.0 }
 0x2a5   : > { %v1450_v1 = vpop.permute.xlu1 %1449  ;;  %v1731_v20 = vmin.f32 %v1715_v5, 6.0  ;;  %v1694_v19 = vadd.f32 %v4570_v26, %v1670_v18  ;;  %v1695_v28 = vadd.f32 %v4570_v26, %v1671_v24  ;;  %v1696_v60 = vadd.f32 %v4570_v26, %v4563_v27 }
 0x2a6   : > { %1796 = vadd.xlane.f32.xlu2 %v1795_v43  ;;  %v1780_v34 = vadd.f32 %v4625_v48, %v4621_v36  ;;  %v1454_v40 = vsel %vm1453_vm7, %v4363_v56, %v1450_v1  ;;  %v1732_v49 = vmin.f32 %v1716_v21, 6.0  ;;  %v1661_v58 = vadd.f32 %v4580_v11, %v4524_v33 }
 0x2a7   : > { %v5056_v12 = vperm.slane %v4301_v63, 6  ;;  %v1747_v38 = vmul.f32 %v1731_v20, %v1683_v0  ;;  %v1710_v22 = vadd.f32 3.0, %v1694_v19  ;;  %v1741_v27 = vmin.f32 %v1725_v32, 6.0 }
 0x2a8   : > { %1781 = vadd.xlane.f32.xlu1 %v1780_v34  ;;  %v1748_v42 = vmul.f32 %v1732_v49, %v1684_v4  ;;  %v1711_v26 = vadd.f32 3.0, %v1695_v28  ;;  %v1712_v54 = vadd.f32 3.0, %v1696_v60  ;;  %v1685_v33 = vadd.f32 %v4539_v2, %v1661_v58  ;;  %v5058_v58 = vld [vmem:[#allocation43_spill] sm:$0xff] }
 0x2a9   : > { %v1497_v25 = vmul.f32 %v5056_v12, %v1454_v40  ;;  %v4641_v35 = vmul.f32 0.16666667, %v1747_v38  ;;  %v1726_v9 = vmax.f32 %v1710_v22, 0.0  ;;  %v1757_v0 = vmul.f32 %v1741_v27, %v4595_v44 }
 0x2aa   : > { %v4643_v56 = vmul.f32 0.16666667, %v1748_v42  ;;  %v1727_v47 = vmax.f32 %v1711_v26, 0.0  ;;  %v1728_v23 = vmax.f32 %v1712_v54, 0.0  ;;  %v1468_v15 = vsel %vm1453_vm7, %v1450_v1, %v4333_v61 }
 0x2ab   : > { %v1521_v13 = vmul.f32 %v4449_v62, %v1497_v25  ;;  %v1742_v17 = vmin.f32 %v1726_v9, 6.0  ;;  %v4658_v10 = vmul.f32 0.16666667, %v1757_v0  ;;  %v5057_v24 = vperm.slane %v4301_v63, 7 }
 0x2ac   : > { %v1792_v4 = vadd.f32 %v4643_v56, %v4641_v35  ;;  %v1743_v37 = vmin.f32 %v1727_v47, 6.0  ;;  %v1744_v18 = vmin.f32 %v1728_v23, 6.0  ;;  %v5059_v47 = vmov 3  }
 0x2ad   : > { %v1537_v11 = vadd.f32 %v1521_v13, %v4497_v41  ;;  %v1572_v6 = vpop.permute.xlu1 %1571  ;;  %v1758_v59 = vmul.f32 %v1742_v17, %v1694_v19  ;;  %v1701_v41 = vadd.f32 3.0, %v1685_v33  ;;  %v1498_v61 = vmul.f32 %v5057_v24, %v1468_v15 }
 0x2ae   : > { %1793 = vadd.xlane.f32.xlu2 %v1792_v4  ;;  %v1582_v31 = vsel %vm1579_vm8, %v4488_v14, %v1572_v6  ;;  %v1759_v21 = vmul.f32 %v1743_v37, %v1695_v28  ;;  %v1760_v1 = vmul.f32 %v1744_v18, %v1696_v60  ;;  %v2736_v24 = vmov 0.0  }
 0x2af   : > { %v1622_v44 = vmul.f32 %v1606_v29, %v1582_v31  ;;  %v4660_v53 = vmul.f32 0.16666667, %v1758_v59  ;;  %v1717_v32 = vmax.f32 %v1701_v41, 0.0  ;;  %v1522_v29 = vmul.f32 %v4449_v62, %v1498_v61 }
 0x2b0   : > { %v4669_v19 = vmul.f32 0.16666667, %v1759_v21  ;;  %v4681_v62 = vmul.f32 0.16666667, %v1760_v1  ;;  %v2436_v61 = vsel %vm1785_vm9, 1.0, %v2736_v24  ;;  %v2438_v21 = vsel %vm1815_vm11, 1.0, %v2736_v24 }
 0x2b1   : > { %v1646_v5 = vmul.f32 %v4485_v52, %v1622_v44  ;;  %v1810_v43 = vadd.f32 %v4660_v53, %v4658_v10  ;;  %v1733_v28 = vmin.f32 %v1717_v32, 6.0  ;;  %v1538_v12 = vadd.f32 %v1522_v29, %v4506_v7 }
 0x2b2   : > { %v2439_v29 = vsel %vm1830_vm12, 1.0, %v2736_v24 }
 0x2b3   : > { %v1662_v14 = vadd.f32 %v1646_v5, %v4526_v50  ;;  %1811 = vadd.xlane.f32.xlu1 %v1810_v43  ;;  %v2437_v5 = vsel %vm1800_vm10, 1.0, %v2736_v24 }
 0x2b5   : > { %v1576_v20 = vpop.permute.xlu1 %1575  ;;  %v1686_v34 = vadd.f32 %v4539_v2, %v1662_v14 }
 0x2b6   : > { %v1580_v63 = vsel %vm1579_vm8, %v1572_v6, %v1576_v20  ;;  %v1594_v40 = vsel %vm1579_vm8, %v1576_v20, %v4533_v16  ;;  %v1825_v16 = vadd.f32 %v4681_v62, %v4669_v19 }
 0x2b7   : > { %v1623_v50 = vmul.f32 %v1607_v46, %v1580_v63  ;;  %v1624_v60 = vmul.f32 %v1608_v39, %v1594_v40  ;;  %v1702_v49 = vadd.f32 3.0, %v1686_v34  ;;  %1839 = vperm.xlu0 %2567, %v5058_v58   ;;  %v1749_v39 = vmul.f32 %v1733_v28, %v1685_v33 }
 0x2b9   : > { %v1647_v25 = vmul.f32 %v4485_v52, %v1623_v50  ;;  %v1648_v38 = vmul.f32 %v4485_v52, %v1624_v60  ;;  %v1718_v22 = vmax.f32 %v1702_v49, 0.0  ;;  %v4691_v13 = vmul.f32 0.16666667, %v1749_v39 }
 0x2bb   : > { %v1663_v42 = vadd.f32 %v1647_v25, %v1537_v11  ;;  %v1664_v46 = vadd.f32 %v1648_v38, %v1538_v12  ;;  %1826 = vadd.xlane.f32.xlu1 %v1825_v16  ;;  %v1734_v30 = vmin.f32 %v1718_v22, 6.0 }
 0x2bd   : > { %v1750_v27 = vmul.f32 %v1734_v30, %v1686_v34  ;;  %v1687_v26 = vadd.f32 %v4539_v2, %v1663_v42  ;;  %v1688_v54 = vadd.f32 %v4539_v2, %v1664_v46 }
 0x2bf   : > { %v4693_v7 = vmul.f32 0.16666667, %v1750_v27  ;;  %v1703_v9 = vadd.f32 3.0, %v1687_v26  ;;  %v1704_v52 = vadd.f32 3.0, %v1688_v54  ;;  %2571 = vset.pattern.permute.xlu0 %v5059_v47 }
 0x2c1   : > { %v1807_v11 = vadd.f32 %v4693_v7, %v4691_v13  ;;  %v1719_v17 = vmax.f32 %v1703_v9, 0.0  ;;  %v1720_v0 = vmax.f32 %v1704_v52, 0.0 }
 0x2c3   : > { %1808 = vadd.xlane.f32.xlu2 %v1807_v11  ;;  %v1735_v33 = vmin.f32 %v1719_v17, 6.0  ;;  %v1736_v23 = vmin.f32 %v1720_v0, 6.0  ;;  %v1867_v11 = vld [vmem:[%s4826_s5] sm:$0xff]  ;;  %v1868_v17 = vld [vmem:[%s4826_s5 + $0x8] sm:$0xff] }
 0x2c4   : > { %v1914_v0 = vld [vmem:[#allocation5 + $0x40] sm:$0xff] }
 0x2c5   : > { %v1751_v4 = vmul.f32 %v1735_v33, %v1687_v26  ;;  %v1752_v15 = vmul.f32 %v1736_v23, %v1688_v54  ;;  %v1837_v26 = vld [vmem:[%s4825_s4] sm:$0xff]  ;;  %v1915_v33 = vld [vmem:[#allocation5 + $0x48] sm:$0xff]  ;;  %v1916_v23 = vld [vmem:[#allocation5 + $0x50] sm:$0xff]  ;;  %1943 = vmatpush.msra.mxu2 %v1914_v0 }
 0x2c6   : > { %1966 = vmatpush.msra.mxu3 %v1915_v33  ;;  %v2577_v0 = vld [vmem:[%s2879_s7 + $0x8] sm:$0xff] }
 0x2c7   : > { %v4698_v6 = vmul.f32 0.16666667, %v1751_v4  ;;  %v4700_v2 = vmul.f32 0.16666667, %v1752_v15  ;;  %v1917_v4 = vld [vmem:[#allocation5 + $0x58] sm:$0xff]  ;;  %v1918_v15 = vld [vmem:[#allocation5 + $0x60] sm:$0xff] }
 0x2c8   : > { %2035 = vmatpush.msrb.mxu2 %v1918_v15 }
 0x2c9   : > { %v1822_v59 = vadd.f32 %v4700_v2, %v4698_v6 }
 0x2cb   : > { %1823 = vadd.xlane.f32.xlu2 %v1822_v59  ;;  %v1919_v59 = vld [vmem:[#allocation5 + $0x68] sm:$0xff] }
 0x2cc   : > { %2058 = vmatpush.msrb.mxu3 %v1919_v59 }
 0x2d4   : > { %1870 = vperm.xlu1 %2568, %v5058_v58  }
 0x2dc   : > { %2570 = vset.pattern.permute.xlu1 %v5059_v47 }
 0x2dd   : > { %2130 = vperm.xlu1 %2570, %v5058_v58  }
 0x2e3   : > { %1874 = vperm.xlu2 %2569, %v4200_v8  }
 0x316   : > { %v1779_v60 = vpop.xlane.xlu0 %1778 }
 0x317   : > { %v1783_v12 = vmul.f32 0.00390625, %v1779_v60 }
 0x319   : > { %v1797_v31 = vpop.xlane.xlu2 %1796  ;;  %v1788_v16 = vmul.f32 %v2436_v61, %v1783_v12 }
 0x31a   : > { %v1799_v44 = vmul.f32 0.00390625, %v1797_v31  ;;  %v1921_v31 = vld [vmem:[#allocation5 + $0x78] sm:$0xff] }
 0x31b   : > { %v1782_v37 = vpop.xlane.xlu1 %1781 }
 0x31c   : > { %v1784_v18 = vmul.f32 0.00390625, %v1782_v37  ;;  %v1804_v32 = vmul.f32 %v2437_v5, %v1799_v44  ;;  %v1920_v37 = vld [vmem:[#allocation5 + $0x70] sm:$0xff] }
 0x31e   : > { %v1789_v14 = vmul.f32 %v2436_v61, %v1784_v18 }
 0x320   : > { %v1806_v34 = vadd.f32 %v1804_v32, %v1789_v14 }
 0x321   : > { %v1794_v1 = vpop.xlane.xlu2 %1793 }
 0x322   : > { %v1798_v58 = vmul.f32 0.00390625, %v1794_v1 }
 0x324   : > { %v1803_v38 = vmul.f32 %v2437_v5, %v1798_v58 }
 0x326   : > { %v1812_v41 = vpop.xlane.xlu1 %1811  ;;  %v1805_v55 = vadd.f32 %v1803_v38, %v1788_v16  ;;  %v2128_v38 = vld [vmem:[%s4824_s3] sm:$0xff] }
 0x327   : > { %v1814_v43 = vmul.f32 0.00390625, %v1812_v41 }
 0x329   : > { %v1819_v8 = vmul.f32 %v2438_v21, %v1814_v43  ;;  %v1840_v54 = vpop.permute.xlu0 %1839 }
 0x32b   : > { %v1821_v40 = vadd.f32 %v1819_v8, %v1806_v34 }
 0x32e   : > { %v1827_v20 = vpop.xlane.xlu1 %1826 }
 0x32f   : > { %v1829_v63 = vmul.f32 0.00390625, %v1827_v20 }
 0x331   : > { %v1834_v28 = vmul.f32 %v2439_v29, %v1829_v63 }
 0x333   : > { %v1836_v50 = vadd.f32 %v1834_v28, %v1821_v40 }
 0x335   : > { %1860 = vmatpush.msra.mxu0 %v1836_v50 }
 0x336   : > { %v1809_v49 = vpop.xlane.xlu2 %1808 }
 0x337   : > { %v1813_v25 = vmul.f32 0.00390625, %v1809_v49 }
 0x339   : > { %v1818_v22 = vmul.f32 %v2438_v21, %v1813_v25 }
 0x33b   : > { %v1820_v30 = vadd.f32 %v1818_v22, %v1805_v55 }
 0x33e   : > { %v1824_v42 = vpop.xlane.xlu2 %1823 }
 0x33f   : > { %v1828_v46 = vmul.f32 0.00390625, %v1824_v42 }
 0x341   : > { %v1833_v39 = vmul.f32 %v2439_v29, %v1828_v46 }
 0x343   : > { %v1835_v27 = vadd.f32 %v1833_v39, %v1820_v30 }
 0x345   : > { %1861 = vmatpush.msra.mxu0 %v1835_v27 }
 0x346   : > { %2440 = vmatmul.msk.f32.vlgmr.msra.gmra.mxu0 %vm1842_vm13, %v1837_v26  ;;  %v1871_v41 = vpop.permute.xlu1 %1870  ;;  %v1875_v5 = vpop.permute.xlu2 %1874 }
 0x347   : > { %1989 = vmatpush.msrb.mxu0 %v1916_v23  ;;  %v2578_v23 = vld [vmem:[%s2879_s7] sm:$0xff] }
 0x349   : > { %2081 = vmatpush.msra.mxu0 %v1920_v37  ;;  %v2579_v37 = vld [vmem:[%s2879_s7 + $0x30] sm:$0xff] }
 0x3c3   : > { %v1863_v9 = vpop.f32.mrf.mxu0 }
 0x3c4   : > { %v1864_v52 = vadd.f32 %v1863_v9, %v1840_v54 }
 0x3c6   : > { %v1866_v47 = vmax.f32 %v1864_v52, 0.0 }
 0x3c8   : > { %1898 = vmatpush.msra.mxu1 %v1866_v47 }
 0x3c9   : > { %2441 = vmatmul.msk.f32.vlgmr.msra.gmra.mxu1 %vm365_vm0, %v1867_v11 }
 0x3ca   : > { %2012 = vmatpush.msrb.mxu1 %v1917_v4 }
 0x3cc   : > { %2104 = vmatpush.msra.mxu1 %v1921_v31 }
 0x3d1   : > { %2442 = vmatmul.msk.f32.gmra.mxu1 %vm365_vm0, %v1868_v17 }
 0x446   : > { %v1900_v44 = vpop.f32.mrf.mxu1 }
 0x447   : > { %v1901_v18 = vadd.f32 %v1900_v44, %v1871_v41 }
 0x449   : > { %v1906_v24 = vadd.f32 3.0, %v1901_v18 }
 0x44b   : > { %v1908_v61 = vmax.f32 %v1906_v24, 0.0 }
 0x44d   : > { %v1910_v43 = vmin.f32 %v1908_v61, 6.0  ;;  %v2580_v61 = vld [vmem:[%s2879_s7 + $0x18] sm:$0xff] }
 0x44e   : > { %v1903_v21 = vpop.f32.mrf.mxu1 }
 0x44f   : > { %v1912_v32 = vmul.f32 0.16666667, %v1910_v43  ;;  %v1904_v14 = vadd.f32 %v1903_v21, %v1875_v5  ;;  %v2581_v43 = vld [vmem:[%s2879_s7 + $0x28] sm:$0xff] }
 0x451   : > { %v1907_v8 = vadd.f32 3.0, %v1904_v14  ;;  %2443 = vmatmul.msk.f32.vlgmr.msra.gmra.mxu2 %vm365_vm0, %v1912_v32  ;;  %2445 = vmatmul.msk.f32.vlgmr.msra.gmra.mxu3 %vm365_vm0, %v1912_v32 }
 0x452   : > { %2447 = vmatmul.msk.f32.vlgmr.msrb.gmra.mxu0 %vm365_vm0, %v1912_v32  ;;  %2449 = vmatmul.msk.f32.vlgmr.msrb.gmra.mxu1 %vm365_vm0, %v1912_v32 }
 0x453   : > { %v1909_v1 = vmax.f32 %v1907_v8, 0.0 }
 0x455   : > { %v1911_v29 = vmin.f32 %v1909_v1, 6.0 }
 0x457   : > { %v1913_v20 = vmul.f32 0.16666667, %v1911_v29  ;;  %v2582_v29 = vld [vmem:[%s2879_s7 + $0x20] sm:$0xff] }
 0x459   : > { %2444 = vmatmul.msk.f32.gmra.mxu2 %vm365_vm0, %v1913_v20  ;;  %2446 = vmatmul.msk.f32.gmra.mxu3 %vm365_vm0, %v1913_v20 }
 0x45a   : > { %2448 = vmatmul.msk.f32.gmra.mxu0 %vm365_vm0, %v1913_v20  ;;  %2450 = vmatmul.msk.f32.gmra.mxu1 %vm365_vm0, %v1913_v20 }
 0x461   : > { %2451 = vmatmul.msk.f32.vlgmr.msrb.gmra.mxu2 %vm365_vm0, %v1912_v32  ;;  %2453 = vmatmul.msk.f32.vlgmr.msrb.gmra.mxu3 %vm365_vm0, %v1912_v32 }
 0x462   : > { %2455 = vmatmul.msk.f32.vlgmr.msra.gmra.mxu0 %vm365_vm0, %v1912_v32  ;;  %2457 = vmatmul.msk.f32.vlgmr.msra.gmra.mxu1 %vm365_vm0, %v1912_v32 }
 0x469   : > { %2452 = vmatmul.msk.f32.gmra.mxu2 %vm365_vm0, %v1913_v20  ;;  %2454 = vmatmul.msk.f32.gmra.mxu3 %vm365_vm0, %v1913_v20 }
 0x46a   : > { %2456 = vmatmul.msk.f32.gmra.mxu0 %vm365_vm0, %v1913_v20  ;;  %2458 = vmatmul.msk.f32.gmra.mxu1 %vm365_vm0, %v1913_v20 }
 0x4cf   : > { %v1991_v34 = vpop.f32.mrf.mxu0  ;;  %v2014_v63 = vpop.f32.mrf.mxu1 }
 0x4d0   : > { %v2114_v58 = vmul.f32 %v1991_v34, %v4641_v35  ;;  %v2115_v30 = vmul.f32 %v2014_v63, %v4643_v56  ;;  %v2583_v34 = vld [vmem:[%s2879_s7 + $0x38] sm:$0xff] }
 0x4d4   : > { %v1945_v40 = vpop.f32.mrf.mxu2  ;;  %v1968_v28 = vpop.f32.mrf.mxu3 }
 0x4d5   : > { %v2112_v42 = vmul.f32 %v1945_v40, %v4609_v57 }
 0x4d7   : > { %v1994_v50 = vpop.f32.mrf.mxu0  ;;  %v2017_v60 = vpop.f32.mrf.mxu1 }
 0x4d8   : > { %v2122_v49 = vmul.f32 %v1994_v50, %v4615_v51  ;;  %v2113_v51 = vmul.f32 %v1968_v28, %v4589_v3  ;;  %v2123_v46 = vmul.f32 %v2017_v60, %v4617_v45 }
 0x4da   : > { %2190 = vmatpush.msrb.mxu0 %v2122_v49 }
 0x4dc   : > { %2191 = vmatpush.msrb.mxu0 %v2114_v58  ;;  %v1948_v12 = vpop.f32.mrf.mxu2  ;;  %v1971_v25 = vpop.f32.mrf.mxu3 }
 0x4dd   : > { %v2120_v16 = vmul.f32 %v1948_v12, %v4621_v36  ;;  %v2121_v22 = vmul.f32 %v1971_v25, %v4625_v48  ;;  %2461 = vmatmul.msk.f32.vlgmr.msrb.gmra.mxu0 %vm1842_vm13, %v2128_v38 }
 0x4df   : > { %v2083_v55 = vpop.f32.mrf.mxu0  ;;  %v2106_v35 = vpop.f32.mrf.mxu1  ;;  %2150 = vmatpush.msra.mxu2 %v2120_v16  ;;  %2170 = vmatpush.msra.mxu3 %v2121_v22 }
 0x4e0   : > { %v2118_v45 = vmul.f32 %v2083_v55, %v4698_v6  ;;  %v2119_v26 = vmul.f32 %v2106_v35, %v4700_v2  ;;  %v2576_v2 = vld [vmem:[%s2879_s7 + $0x10] sm:$0xff] }
 0x4e1   : > { %2151 = vmatpush.msra.mxu2 %v2112_v42  ;;  %2171 = vmatpush.msra.mxu3 %v2113_v51 }
 0x4e2   : > { %2460 = vmatmul.msk.f32.vlgmr.msra.gmra.mxu3 %vm1842_vm13, %v2128_v38  ;;  %2459 = vmatmul.msk.f32.vlgmr.msra.gmra.mxu2 %vm1842_vm13, %v2128_v38 }
 0x4e3   : > { %2210 = vmatpush.msrb.mxu2 %v2123_v46 }
 0x4e4   : > { %v2037_v36 = vpop.f32.mrf.mxu2  ;;  %v2060_v48 = vpop.f32.mrf.mxu3 }
 0x4e5   : > { %2211 = vmatpush.msrb.mxu2 %v2115_v30 }
 0x4e7   : > { %v2086_v57 = vpop.f32.mrf.mxu0  ;;  %v2109_v3 = vpop.f32.mrf.mxu1 }
 0x4e8   : > { %v2126_v39 = vmul.f32 %v2086_v57, %v4669_v19  ;;  %v2127_v27 = vmul.f32 %v2109_v3, %v4681_v62  ;;  %v2116_v19 = vmul.f32 %v2037_v36, %v4691_v13  ;;  %v2117_v62 = vmul.f32 %v2060_v48, %v4693_v7 }
 0x4ea   : > { %2270 = vmatpush.msrb.mxu1 %v2126_v39  ;;  %2290 = vmatpush.msra.mxu2 %v2127_v27 }
 0x4eb   : > { %2462 = vmatmul.msk.f32.vlgmr.msrb.gmra.mxu2 %vm1842_vm13, %v2128_v38 }
 0x4ec   : > { %2271 = vmatpush.msrb.mxu1 %v2118_v45  ;;  %2291 = vmatpush.msra.mxu2 %v2119_v26  ;;  %v2040_v56 = vpop.f32.mrf.mxu2  ;;  %v2063_v54 = vpop.f32.mrf.mxu3 }
 0x4ed   : > { %v2124_v9 = vmul.f32 %v2040_v56, %v4658_v10  ;;  %v2125_v52 = vmul.f32 %v2063_v54, %v4660_v53  ;;  %2465 = vmatmul.msk.f32.vlgmr.msrb.gmra.mxu1 %vm1842_vm13, %v2128_v38  ;;  %v2131_v10 = vpop.permute.xlu1 %2130 }
 0x4ef   : > { %2230 = vmatpush.msrb.mxu3 %v2124_v9  ;;  %2250 = vmatpush.msra.mxu0 %v2125_v52 }
 0x4f1   : > { %2231 = vmatpush.msrb.mxu3 %v2116_v19  ;;  %2251 = vmatpush.msra.mxu0 %v2117_v62 }
 0x4f2   : > { %2463 = vmatmul.msk.f32.vlgmr.msrb.gmra.mxu3 %vm1842_vm13, %v2128_v38  ;;  %2464 = vmatmul.msk.f32.vlgmr.msra.gmra.mxu0 %vm1842_vm13, %v2128_v38 }
 0x4f3   : > { %2466 = vmatmul.msk.f32.vlgmr.msra.gmra.mxu2 %vm1842_vm13, %v2128_v38 }
 0x55a   : > { %v2193_v53 = vpop.f32.mrf.mxu0 }
 0x55b   : > { %v2194_v6 = vadd.f32 %v2193_v53, %v2131_v10 }
 0x55d   : > { %v2298_v13 = vadd.f32 %v2576_v2, %v2194_v6 }
 0x55f   : > { %2306 = vst [vmem:[%s4770_s13 + $0x10] sm:$0xff] %v2298_v13 }
 0x565   : > { %v2173_v7 = vpop.f32.mrf.mxu3  ;;  %v2153_v47 = vpop.f32.mrf.mxu2 }
 0x566   : > { %v2174_v11 = vadd.f32 %v2173_v7, %v2131_v10  ;;  %v2154_v17 = vadd.f32 %v2153_v47, %v2131_v10 }
 0x568   : > { %v2297_v33 = vadd.f32 %v2577_v0, %v2174_v11  ;;  %v2296_v4 = vadd.f32 %v2578_v23, %v2154_v17 }
 0x56a   : > { %2305 = vst [vmem:[%s4770_s13 + $0x8] sm:$0xff] %v2297_v33  ;;  %v2273_v15 = vpop.f32.mrf.mxu1 }
 0x56b   : > { %2304 = vst [vmem:[%s4770_s13] sm:$0xff] %v2296_v4  ;;  %v2274_v59 = vadd.f32 %v2273_v15, %v2131_v10 }
 0x56d   : > { %v2302_v31 = vadd.f32 %v2579_v37, %v2274_v59 }
 0x56e   : > { %v2213_v41 = vpop.f32.mrf.mxu2 }
 0x56f   : > { %v2214_v44 = vadd.f32 %v2213_v41, %v2131_v10  ;;  %v2253_v18 = vpop.f32.mrf.mxu0  ;;  %2310 = vst [vmem:[%s4770_s13 + $0x30] sm:$0xff] %v2302_v31 }
 0x570   : > { %v2254_v24 = vadd.f32 %v2253_v18, %v2131_v10 }
 0x571   : > { %v2299_v5 = vadd.f32 %v2580_v61, %v2214_v44 }
 0x572   : > { %v2301_v21 = vadd.f32 %v2581_v43, %v2254_v24 }
 0x573   : > { %2307 = vst [vmem:[%s4770_s13 + $0x18] sm:$0xff] %v2299_v5 }
 0x574   : > { %2309 = vst [vmem:[%s4770_s13 + $0x28] sm:$0xff] %v2301_v21 }
 0x575   : > { %v2233_v32 = vpop.f32.mrf.mxu3 }
 0x576   : > { %v2234_v14 = vadd.f32 %v2233_v32, %v2131_v10  ;;  %v2293_v8 = vpop.f32.mrf.mxu2 }
 0x577   : > { %v2294_v1 = vadd.f32 %v2293_v8, %v2131_v10 }
 0x578   : > { %v2300_v20 = vadd.f32 %v2582_v29, %v2234_v14 }
 0x579   : > { %v2303_v63 = vadd.f32 %v2583_v34, %v2294_v1 }
 0x57a   : > { %2308 = vst [vmem:[%s4770_s13 + $0x20] sm:$0xff] %v2300_v20 }
 0x57b   : > { %2311 = vst [vmem:[%s4770_s13 + $0x38] sm:$0xff] %v2303_v63 }
 0x57c   : > { %2671 = shalt.err (!%p2668_p9)
}
 0x57d   : > { %2480 = dma.vmem_to_hbm [thread:$0]  (%p2842_p13), %s2327_s20, 1024, %s2329_s12, %s2313_s18  }
 0x57e PF: > { %s2340_s25 = sand.u32 1, %s2702_s27   ;;  %p5060_p10 = scmp.ge.s32.totalorder %s2714_s30, 2 }
 0x57f   : > { %s2341_s7 = scalar_lea.sflag [#allocation4], %s2340_s25 }
 0x580   : > { %p2491_p11 = pnand %p5060_p10, %p2847_p4 }
 0x582   : > { %p2492_p0 = pneg %p2491_p11 }
 0x584   : > { %2697 = dma.done.wait (%p2492_p0), %s2341_s7, 1024  }
 0x585   : > { %2699 = vsyncadd (%p2492_p0), %s2341_s7, 4294966272  ;;  %s5061_s13 = sld [smem:[#allocation11_spill]]  ;;  %p22_p2 = scmp.ge.s32.totalorder %s2822_s19, 4  }
 0x586   : > { %s5062_s27 = smov %s2706_s28  ;;  %s5063_s28 = smov %s2710_s29 }
 0x587   : > { %s5065_s30 = smov %s2822_s19  ;;  %24 = sbr.rel (!%p22_p2) target bundleno = 8 (0x8), region = 108 }
 0x58b   : > { %s5064_s29 = smov %s5061_s13 }
 0x58c   :  { %2347 = vsyncpa [#allocation3], 1 }
 0x58d   :  { %2349 = vsyncpa [#allocation3 + $0x1], 1 }
 0x58e   :  { %2350 = vsyncpa [#allocation6], 1 }
 0x58f   :  { %2351 = vsyncpa [#allocation4], 1 }
 0x590   :  { %2353 = vsyncpa [#allocation4 + $0x1], 1 }

</bundles_post_ra>
